<compile_context>
chip_gen: v5e
topology: v5e:2x2
jax: 0.10.0
libtpu: 0.0.40
codegen_flags: <defaults>
</compile_context>

<pallas_src>
import jax
import jax.numpy as jnp
from jax.experimental import pallas as pl
from jax.experimental.pallas import tpu as pltpu


# --------------------------------------------------------------------------
# Kernel
# --------------------------------------------------------------------------
def _fused_mlp_kernel(
    x_ref, w1x_ref, mask_ref, w1m_ref, b1_ref,
    w2_ref, b2_ref, w3_ref, b3_ref, w4_ref, b4_ref,
    o_ref, acc_ref,
):
    """Fused fc1(+split concat) -> relu -> fc2 -> relu -> fc3 -> relu -> fc4."""
    k = pl.program_id(0)

    @pl.when(k == 0)
    def _():
        # Seed the layer-1 accumulator with the (small) mask branch + bias.
        acc_ref[...] = (
            jnp.dot(mask_ref[...].astype(w1m_ref.dtype), w1m_ref[...],
                    preferred_element_type=jnp.float32)
            + b1_ref[...]
        )

    # Streamed partial product of the large x-branch of layer 1.  The LHS is
    # cast to the (possibly bf16) weight-stream dtype so the MXU sees a
    # native input pair; accumulation stays f32.
    acc_ref[...] += jnp.dot(
        x_ref[...].astype(w1x_ref.dtype), w1x_ref[...],
        preferred_element_type=jnp.float32,
    )

    @pl.when(k == pl.num_programs(0) - 1)
    def _():
        h = jnp.maximum(acc_ref[...], 0.0)                                   # relu(fc1)
        h = jnp.dot(h, w2_ref[...], preferred_element_type=jnp.float32) + b2_ref[...]
        h = jnp.maximum(h, 0.0)                                              # relu(fc2)
        h = jnp.dot(h, w3_ref[...], preferred_element_type=jnp.float32) + b3_ref[...]
        h = jnp.maximum(h, 0.0)                                              # relu(fc3)
        h = jnp.dot(h, w4_ref[...], preferred_element_type=jnp.float32) + b4_ref[...]
        o_ref[...] = h.astype(o_ref.dtype)                                   # fc4 (no relu)


# --------------------------------------------------------------------------
# Generation-aware tuning
# --------------------------------------------------------------------------
def _vmem_capacity_bytes():
    try:
        return int(pltpu.get_tpu_info().vmem_capacity_bytes)
    except Exception:
        return 64 * 1024 * 1024  # conservative (v7x-sized) fallback


def _select_tuning(n1, stream_bytes_per_elem):
    """Pick (tk, vmem_limit, stream_buffer_count) for the current chip."""
    cap = _vmem_capacity_bytes()
    if cap >= 128 * 1024 * 1024:          # v5e / v6e: 128 MiB physical VMEM
        vmem_limit = 96 * 1024 * 1024
        tk = 8192
        stream_bufs = 2
    else:                                  # v7x: 64 MiB per TensorCore
        vmem_limit = 48 * 1024 * 1024
        tk = 4096
        stream_bufs = 3
    # Keep the multi-buffered (tk, n1) weight stream within ~half the scoped
    # limit; the rest covers the resident mask-branch weight, layers 2-4, the
    # f32 accumulator and the x tiles.
    budget = vmem_limit // 2
    while tk > 512 and stream_bufs * tk * n1 * stream_bytes_per_elem > budget:
        tk //= 2
    return tk, vmem_limit, stream_bufs


# --------------------------------------------------------------------------
# One-time parameter preparation (NOT per forward call)
# --------------------------------------------------------------------------
def prepare_params(params, x_features, mask_features, *, stream_dtype=jnp.float32):
    """Split / pad / cast the weights once at load time.

    * w1 -> (w1x, w1m) so the concat never exists (and the slice copy never
      hits the forward path's HBM traffic).
    * w1x reduction dim zero-padded to a multiple of the streaming tile tk.
    * layer-1 stream optionally cast to bf16 (accumulation stays f32).
    * w4 / b4 lane-padded to a multiple of 128 for an unmasked final store.
    """
    (w1, b1), (w2, b2), (w3, b3), (w4, b4) = params
    Kx, Km = int(x_features), int(mask_features)
    assert w1.shape[0] == Kx + Km

    n1, n2, n3, n_out = w1.shape[1], w2.shape[1], w3.shape[1], w4.shape[1]

    stream_bytes = jnp.dtype(stream_dtype).itemsize
    tk, vmem_limit, stream_bufs = _select_tuning(n1, stream_bytes)
    tk = max(1, min(tk, Kx))

    w1x = w1[:Kx].astype(stream_dtype)
    w1m = w1[Kx:].astype(stream_dtype)

    k_pad = -(-Kx // tk) * tk
    if k_pad != Kx:
        w1x = jnp.pad(w1x, ((0, k_pad - Kx), (0, 0)))  # zeros don't change the sum

    n_out_pad = max(128, -(-n_out // 128) * 128)
    if n_out_pad != n_out:
        w4 = jnp.pad(w4, ((0, 0), (0, n_out_pad - n_out)))
        b4 = jnp.pad(b4, ((0, n_out_pad - n_out),))

    return dict(
        w1x=w1x, w1m=w1m,
        b1=b1.reshape(1, n1).astype(jnp.float32),
        w2=w2, b2=b2.reshape(1, n2),
        w3=w3, b3=b3.reshape(1, n3),
        w4=w4, b4=b4.reshape(1, n_out_pad),
        Kx=Kx, Km=Km, k_pad=k_pad, tk=tk,
        n1=n1, n2=n2, n3=n3, n_out=n_out, n_out_pad=n_out_pad,
        vmem_limit=vmem_limit, stream_bufs=stream_bufs,
    )


# --------------------------------------------------------------------------
# Forward
# --------------------------------------------------------------------------
def _build_in_specs(prep, B, mode):
    """mode: 'full' (buffered streams + single-buffered residents),
             'stream' (buffered streams only), 'plain' (no pipeline_mode)."""
    tk, Km = prep["tk"], prep["Km"]
    n1, n2, n3, n_out_pad = prep["n1"], prep["n2"], prep["n3"], prep["n_out_pad"]

    stream_bufs = prep["stream_bufs"] if mode in ("full", "stream") else None
    resident_bufs = 1 if mode == "full" else None

    def spec(shape, index_map, bufs):
        if bufs is None:
            return pl.BlockSpec(shape, index_map)
        return pl.BlockSpec(shape, index_map, pipeline_mode=pl.Buffered(bufs))

    return [
        spec((B, tk), lambda k: (0, k), stream_bufs),            # x_flat tile
        spec((tk, n1), lambda k: (k, 0), stream_bufs),           # w1 x-branch tile
        spec((B, Km), lambda k: (0, 0), resident_bufs),          # mask_flat (resident)
        spec((Km, n1), lambda k: (0, 0), resident_bufs),         # w1 mask-branch
        spec((1, n1), lambda k: (0, 0), resident_bufs),          # b1
        spec((n1, n2), lambda k: (0, 0), resident_bufs),         # w2
        spec((1, n2), lambda k: (0, 0), resident_bufs),          # b2
        spec((n2, n3), lambda k: (0, 0), resident_bufs),         # w3
        spec((1, n3), lambda k: (0, 0), resident_bufs),          # b3
        spec((n3, n_out_pad), lambda k: (0, 0), resident_bufs),  # w4 (lane-padded)
        spec((1, n_out_pad), lambda k: (0, 0), resident_bufs),   # b4 (lane-padded)
    ]


def neural_net_forward(prepared, mask, x):
    """Pallas equivalent of NeuralNet.forward (params via prepare_params)."""
    B = x.shape[0]
    x_flat = x.reshape(B, -1)          # torch.flatten(x, 1)
    mask_flat = mask.reshape(B, -1)    # torch.flatten(mask, 1)
    assert x_flat.shape[1] == prepared["Kx"]
    assert mask_flat.shape[1] == prepared["Km"]

    k_pad, tk = prepared["k_pad"], prepared["tk"]
    if k_pad != prepared["Kx"]:
        # Cheap (B rows only); the weight-side pad happened once at prep time.
        x_flat = jnp.pad(x_flat, ((0, 0), (0, k_pad - prepared["Kx"])))

    def run(mode):
        return pl.pallas_call(
            _fused_mlp_kernel,
            out_shape=jax.ShapeDtypeStruct((B, prepared["n_out_pad"]), x.dtype),
            grid_spec=pltpu.PrefetchScalarGridSpec(
                num_scalar_prefetch=0,
                grid=(k_pad // tk,),
                in_specs=_build_in_specs(prepared, B, mode),
                out_specs=pl.BlockSpec((B, prepared["n_out_pad"]), lambda k: (0, 0)),
                scratch_shapes=[pltpu.VMEM((B, prepared["n1"]), jnp.float32)],
            ),
            compiler_params=pltpu.CompilerParams(
                dimension_semantics=("arbitrary",),          # reduction axis
                vmem_limit_bytes=prepared["vmem_limit"],     # generation-specific
            ),
        )(
            x_flat, prepared["w1x"], mask_flat, prepared["w1m"], prepared["b1"],
            prepared["w2"], prepared["b2"], prepared["w3"], prepared["b3"],
            prepared["w4"], prepared["b4"],
        )

    cached = prepared.get("_pipeline_mode")
    if cached is not None:
        modes = [cached]
    else:
        modes = (["full", "stream"] if hasattr(pl, "Buffered") else []) + ["plain"]

    out, last_err = None, None
    for mode in modes:
        try:
            out = run(mode)
            prepared["_pipeline_mode"] = mode
            break
        except Exception as e:  # fall back if pipeline_mode unsupported
            last_err = e
    if out is None:
        raise last_err

    return out[:, :prepared["n_out"]]


# --------------------------------------------------------------------------
# PyTorch-style init (weights stored transposed: (in_features, out_features))
# --------------------------------------------------------------------------
def init_linear_params(key, in_features, out_features):
    kw, kb = jax.random.split(key)
    bound = 1.0 / jnp.sqrt(jnp.float32(in_features))
    w = jax.random.uniform(kw, (in_features, out_features), jnp.float32, -bound, bound)
    b = jax.random.uniform(kb, (out_features,), jnp.float32, -bound, bound)
    return w, b


if __name__ == "__main__":
    # Small shapes consistent with the module's forward:
    #   x: (B, C, H, W) -> B x (C*H*W);  mask: (B, H, W) -> B x (H*W)
    # (The module hard-codes 64*64*64 + 64*64 features; same structure here
    #  at small scale: 4*16*16 + 16*16 = 1280.)
    B, C, H, W = 2, 4, 16, 16
    n1, n2, n3, out_channels = 256, 128, 64, 10
    Kx, Km = C * H * W, H * W
    in_features = Kx + Km  # 1280

    key = jax.random.PRNGKey(0)
    k_x, k_m, k1, k2, k3, k4 = jax.random.split(key, 6)

    x = jax.random.normal(k_x, (B, C, H, W), jnp.float32)
    mask = jax.random.normal(k_m, (B, H, W), jnp.float32)

    params = (
        init_linear_params(k1, in_features, n1),
        init_linear_params(k2, n1, n2),
        init_linear_params(k3, n2, n3),
        init_linear_params(k4, n3, out_channels),
    )

    # Pure-JAX reference of the same math (with the explicit concatenate).
    h_ref = jnp.concatenate((x.reshape(B, -1), mask.reshape(B, -1)), axis=1)
    for i, (w, b) in enumerate(params):
        h_ref = h_ref @ w + b
        if i < 3:
            h_ref = jnp.maximum(h_ref, 0.0)

    # f32 weight stream: matches the reference tightly.
    prep_f32 = prepare_params(params, Kx, Km, stream_dtype=jnp.float32)
    out_f32 = jax.block_until_ready(neural_net_forward(prep_f32, mask, x))
    assert out_f32.shape == (B, out_channels)
    assert jnp.allclose(out_f32, h_ref, atol=1e-4, rtol=1e-4)

    # bf16 layer-1 weight stream: halves HBM bytes on the dominant (Kx, n1)
    # stream; accumulation stays f32, so only a small bf16 rounding error.
    prep_bf16 = prepare_params(params, Kx, Km, stream_dtype=jnp.bfloat16)
    out_bf16 = jax.block_until_ready(neural_net_forward(prep_bf16, mask, x))
    assert out_bf16.shape == (B, out_channels)
    assert jnp.allclose(out_bf16, h_ref, atol=5e-2, rtol=5e-2)

    print("KERNEL_OK")
</pallas_src>

<mosaic_0001>
module attributes {stable_mosaic.version = 11 : i64} {
  func.func @_fused_mlp_kernel(%arg0: i32, %arg1: memref<2x1024xf32, #tpu.memory_space<vmem>>, %arg2: memref<1024x256xf32, #tpu.memory_space<vmem>>, %arg3: memref<2x256xf32, #tpu.memory_space<vmem>>, %arg4: memref<256x256xf32, #tpu.memory_space<vmem>>, %arg5: memref<1x256xf32, #tpu.memory_space<vmem>>, %arg6: memref<256x128xf32, #tpu.memory_space<vmem>>, %arg7: memref<1x128xf32, #tpu.memory_space<vmem>>, %arg8: memref<128x64xf32, #tpu.memory_space<vmem>>, %arg9: memref<1x64xf32, #tpu.memory_space<vmem>>, %arg10: memref<64x128xf32, #tpu.memory_space<vmem>>, %arg11: memref<1x128xf32, #tpu.memory_space<vmem>>, %arg12: memref<2x128xf32, #tpu.memory_space<vmem>>, %arg13: memref<2x256xf32, #tpu.memory_space<vmem>>) attributes {dimension_semantics = [#tpu.dimension_semantics<arbitrary>], iteration_bounds = array<i64: 1>, scalar_prefetch = 0 : i64, scratch_operands = 1 : i64, tpu.core_type = #tpu.core_type<tc>, window_params = [{transform_indices = @transform_0, window_bounds = array<i64: 2, 1024>}, {transform_indices = @transform_1, window_bounds = array<i64: 1024, 256>}, {pipeline_mode = #tpu.pipeline_mode<synchronous>, transform_indices = @transform_2, window_bounds = array<i64: 2, 256>}, {pipeline_mode = #tpu.pipeline_mode<synchronous>, transform_indices = @transform_3, window_bounds = array<i64: 256, 256>}, {pipeline_mode = #tpu.pipeline_mode<synchronous>, transform_indices = @transform_4, window_bounds = array<i64: 1, 256>}, {pipeline_mode = #tpu.pipeline_mode<synchronous>, transform_indices = @transform_5, window_bounds = array<i64: 256, 128>}, {pipeline_mode = #tpu.pipeline_mode<synchronous>, transform_indices = @transform_6, window_bounds = array<i64: 1, 128>}, {pipeline_mode = #tpu.pipeline_mode<synchronous>, transform_indices = @transform_7, window_bounds = array<i64: 128, 64>}, {pipeline_mode = #tpu.pipeline_mode<synchronous>, transform_indices = @transform_8, window_bounds = array<i64: 1, 64>}, {pipeline_mode = #tpu.pipeline_mode<synchronous>, transform_indices = @transform_9, window_bounds = array<i64: 64, 128>}, {pipeline_mode = #tpu.pipeline_mode<synchronous>, transform_indices = @transform_10, window_bounds = array<i64: 1, 128>}, {pipeline_mode = #tpu.pipeline_mode<synchronous>, transform_indices = @transform_11, window_bounds = array<i64: 2, 128>}]} {
    %c0_i32 = arith.constant 0 : i32
    %0 = arith.cmpi eq, %arg0, %c0_i32 : i32
    %1 = arith.extui %0 : i1 to i32
    %c0_i32_0 = arith.constant 0 : i32
    %2 = arith.cmpi ne, %1, %c0_i32_0 : i32
    scf.if %2 {
      %c0_10 = arith.constant 0 : index
      %c0_11 = arith.constant 0 : index
      %12 = vector.load %arg3[%c0_10, %c0_11] : memref<2x256xf32, #tpu.memory_space<vmem>>, vector<2x256xf32>
      %c0_12 = arith.constant 0 : index
      %c0_13 = arith.constant 0 : index
      %13 = vector.load %arg4[%c0_12, %c0_13] : memref<256x256xf32, #tpu.memory_space<vmem>>, vector<256x256xf32>
      %cst_14 = arith.constant dense<0.000000e+00> : vector<2x256xf32>
      %14 = tpu.matmul %12, %13, %cst_14 {dimension_numbers = #tpu.dot_dimension_numbers<[1], [0], [0], [1], [0, 0, 1, 1], [], []>} : vector<2x256xf32>, vector<256x256xf32>, vector<2x256xf32> -> vector<2x256xf32>
      %c0_15 = arith.constant 0 : index
      %c0_16 = arith.constant 0 : index
      %15 = vector.load %arg5[%c0_15, %c0_16] : memref<1x256xf32, #tpu.memory_space<vmem>>, vector<1x256xf32>
      %16 = vector.broadcast %15 : vector<1x256xf32> to vector<2x256xf32>
      %17 = arith.addf %14, %16 : vector<2x256xf32>
      %c0_17 = arith.constant 0 : index
      %c0_18 = arith.constant 0 : index
      %18 = vector.load %arg13[%c0_17, %c0_18] : memref<2x256xf32, #tpu.memory_space<vmem>>, vector<2x256xf32>
      tpu.vector_store %arg13[%c0_17, %c0_18], %17 {strides = array<i32>} : memref<2x256xf32, #tpu.memory_space<vmem>>, vector<2x256xf32>,
    } else {
    }
    %c0 = arith.constant 0 : index
    %c0_1 = arith.constant 0 : index
    %3 = vector.load %arg13[%c0, %c0_1] : memref<2x256xf32, #tpu.memory_space<vmem>>, vector<2x256xf32>
    %c0_2 = arith.constant 0 : index
    %c0_3 = arith.constant 0 : index
    %4 = vector.load %arg1[%c0_2, %c0_3] : memref<2x1024xf32, #tpu.memory_space<vmem>>, vector<2x1024xf32>
    %c0_4 = arith.constant 0 : index
    %c0_5 = arith.constant 0 : index
    %5 = vector.load %arg2[%c0_4, %c0_5] : memref<1024x256xf32, #tpu.memory_space<vmem>>, vector<1024x256xf32>
    %cst = arith.constant dense<0.000000e+00> : vector<2x256xf32>
    %6 = tpu.matmul %4, %5, %cst {dimension_numbers = #tpu.dot_dimension_numbers<[1], [0], [0], [1], [0, 0, 1, 1], [], []>} : vector<2x1024xf32>, vector<1024x256xf32>, vector<2x256xf32> -> vector<2x256xf32>
    %7 = arith.addf %3, %6 : vector<2x256xf32>
    %c0_6 = arith.constant 0 : index
    %c0_7 = arith.constant 0 : index
    %8 = vector.load %arg13[%c0_6, %c0_7] : memref<2x256xf32, #tpu.memory_space<vmem>>, vector<2x256xf32>
    tpu.vector_store %arg13[%c0_6, %c0_7], %7 {strides = array<i32>} : memref<2x256xf32, #tpu.memory_space<vmem>>, vector<2x256xf32>,
    %c0_i32_8 = arith.constant 0 : i32
    %9 = arith.cmpi eq, %arg0, %c0_i32_8 : i32
    %10 = arith.extui %9 : i1 to i32
    %c0_i32_9 = arith.constant 0 : i32
    %11 = arith.cmpi ne, %10, %c0_i32_9 : i32
    scf.if %11 {
      %c0_10 = arith.constant 0 : index
      %c0_11 = arith.constant 0 : index
      %12 = vector.load %arg13[%c0_10, %c0_11] : memref<2x256xf32, #tpu.memory_space<vmem>>, vector<2x256xf32>
      %cst_12 = arith.constant 0.000000e+00 : f32
      %13 = vector.broadcast %cst_12 : f32 to vector<2x256xf32>
      %14 = arith.maximumf %12, %13 : vector<2x256xf32>
      %c0_13 = arith.constant 0 : index
      %c0_14 = arith.constant 0 : index
      %15 = vector.load %arg6[%c0_13, %c0_14] : memref<256x128xf32, #tpu.memory_space<vmem>>, vector<256x128xf32>
      %cst_15 = arith.constant dense<0.000000e+00> : vector<2x128xf32>
      %16 = tpu.matmul %14, %15, %cst_15 {dimension_numbers = #tpu.dot_dimension_numbers<[1], [0], [0], [1], [0, 0, 1, 1], [], []>} : vector<2x256xf32>, vector<256x128xf32>, vector<2x128xf32> -> vector<2x128xf32>
      %c0_16 = arith.constant 0 : index
      %c0_17 = arith.constant 0 : index
      %17 = vector.load %arg7[%c0_16, %c0_17] : memref<1x128xf32, #tpu.memory_space<vmem>>, vector<1x128xf32>
      %18 = vector.broadcast %17 : vector<1x128xf32> to vector<2x128xf32>
      %19 = arith.addf %16, %18 : vector<2x128xf32>
      %cst_18 = arith.constant 0.000000e+00 : f32
      %20 = vector.broadcast %cst_18 : f32 to vector<2x128xf32>
      %21 = arith.maximumf %19, %20 : vector<2x128xf32>
      %c0_19 = arith.constant 0 : index
      %c0_20 = arith.constant 0 : index
      %22 = vector.load %arg8[%c0_19, %c0_20] : memref<128x64xf32, #tpu.memory_space<vmem>>, vector<128x64xf32>
      %cst_21 = arith.constant dense<0.000000e+00> : vector<2x64xf32>
      %23 = tpu.matmul %21, %22, %cst_21 {dimension_numbers = #tpu.dot_dimension_numbers<[1], [0], [0], [1], [0, 0, 1, 1], [], []>} : vector<2x128xf32>, vector<128x64xf32>, vector<2x64xf32> -> vector<2x64xf32>
      %c0_22 = arith.constant 0 : index
      %c0_23 = arith.constant 0 : index
      %24 = vector.load %arg9[%c0_22, %c0_23] : memref<1x64xf32, #tpu.memory_space<vmem>>, vector<1x64xf32>
      %25 = vector.broadcast %24 : vector<1x64xf32> to vector<2x64xf32>
      %26 = arith.addf %23, %25 : vector<2x64xf32>
      %cst_24 = arith.constant 0.000000e+00 : f32
      %27 = vector.broadcast %cst_24 : f32 to vector<2x64xf32>
      %28 = arith.maximumf %26, %27 : vector<2x64xf32>
      %c0_25 = arith.constant 0 : index
      %c0_26 = arith.constant 0 : index
      %29 = vector.load %arg10[%c0_25, %c0_26] : memref<64x128xf32, #tpu.memory_space<vmem>>, vector<64x128xf32>
      %cst_27 = arith.constant dense<0.000000e+00> : vector<2x128xf32>
      %30 = tpu.matmul %28, %29, %cst_27 {dimension_numbers = #tpu.dot_dimension_numbers<[1], [0], [0], [1], [0, 0, 1, 1], [], []>} : vector<2x64xf32>, vector<64x128xf32>, vector<2x128xf32> -> vector<2x128xf32>
      %c0_28 = arith.constant 0 : index
      %c0_29 = arith.constant 0 : index
      %31 = vector.load %arg11[%c0_28, %c0_29] : memref<1x128xf32, #tpu.memory_space<vmem>>, vector<1x128xf32>
      %32 = vector.broadcast %31 : vector<1x128xf32> to vector<2x128xf32>
      %33 = arith.addf %30, %32 : vector<2x128xf32>
      %c0_30 = arith.constant 0 : index
      %c0_31 = arith.constant 0 : index
      %34 = vector.load %arg12[%c0_30, %c0_31] : memref<2x128xf32, #tpu.memory_space<vmem>>, vector<2x128xf32>
      tpu.vector_store %arg12[%c0_30, %c0_31], %33 {strides = array<i32>} : memref<2x128xf32, #tpu.memory_space<vmem>>, vector<2x128xf32>,
    } else {
    }
    return
  }
  func.func @transform_0(%arg0: i32) -> (i32, i32) {
    %c0_i32 = arith.constant 0 : i32
    %c0_i32_0 = arith.constant 0 : i32
    return %c0_i32, %arg0 : i32, i32
  }
  func.func @transform_1(%arg0: i32) -> (i32, i32) {
    %c0_i32 = arith.constant 0 : i32
    %c0_i32_0 = arith.constant 0 : i32
    return %arg0, %c0_i32 : i32, i32
  }
  func.func @transform_2(%arg0: i32) -> (i32, i32) {
    %c0_i32 = arith.constant 0 : i32
    %c0_i32_0 = arith.constant 0 : i32
    %c0_i32_1 = arith.constant 0 : i32
    return %c0_i32, %c0_i32_0 : i32, i32
  }
  func.func @transform_3(%arg0: i32) -> (i32, i32) {
    %c0_i32 = arith.constant 0 : i32
    %c0_i32_0 = arith.constant 0 : i32
    %c0_i32_1 = arith.constant 0 : i32
    return %c0_i32, %c0_i32_0 : i32, i32
  }
  func.func @transform_4(%arg0: i32) -> (i32, i32) {
    %c0_i32 = arith.constant 0 : i32
    %c0_i32_0 = arith.constant 0 : i32
    %c0_i32_1 = arith.constant 0 : i32
    return %c0_i32, %c0_i32_0 : i32, i32
  }
  func.func @transform_5(%arg0: i32) -> (i32, i32) {
    %c0_i32 = arith.constant 0 : i32
    %c0_i32_0 = arith.constant 0 : i32
    %c0_i32_1 = arith.constant 0 : i32
    return %c0_i32, %c0_i32_0 : i32, i32
  }
  func.func @transform_6(%arg0: i32) -> (i32, i32) {
    %c0_i32 = arith.constant 0 : i32
    %c0_i32_0 = arith.constant 0 : i32
    %c0_i32_1 = arith.constant 0 : i32
    return %c0_i32, %c0_i32_0 : i32, i32
  }
  func.func @transform_7(%arg0: i32) -> (i32, i32) {
    %c0_i32 = arith.constant 0 : i32
    %c0_i32_0 = arith.constant 0 : i32
    %c0_i32_1 = arith.constant 0 : i32
    return %c0_i32, %c0_i32_0 : i32, i32
  }
  func.func @transform_8(%arg0: i32) -> (i32, i32) {
    %c0_i32 = arith.constant 0 : i32
    %c0_i32_0 = arith.constant 0 : i32
    %c0_i32_1 = arith.constant 0 : i32
    return %c0_i32, %c0_i32_0 : i32, i32
  }
  func.func @transform_9(%arg0: i32) -> (i32, i32) {
    %c0_i32 = arith.constant 0 : i32
    %c0_i32_0 = arith.constant 0 : i32
    %c0_i32_1 = arith.constant 0 : i32
    return %c0_i32, %c0_i32_0 : i32, i32
  }
  func.func @transform_10(%arg0: i32) -> (i32, i32) {
    %c0_i32 = arith.constant 0 : i32
    %c0_i32_0 = arith.constant 0 : i32
    %c0_i32_1 = arith.constant 0 : i32
    return %c0_i32, %c0_i32_0 : i32, i32
  }
  func.func @transform_11(%arg0: i32) -> (i32, i32) {
    %c0_i32 = arith.constant 0 : i32
    %c0_i32_0 = arith.constant 0 : i32
    %c0_i32_1 = arith.constant 0 : i32
    return %c0_i32, %c0_i32_0 : i32, i32
  }
}

</mosaic_0001>

<bundles_post_ra>
// kernel: tpu_custom_call.1
= control target key start
LH: loop header
LB: loop body
LE: loop exit
PB: predicated region body
PF: predicated region fallthrough
CT: control target
= control target key end

     0   :  { %16 = vsyncpa [#allocation4], 0  ;;  %s1375_s0 = inlined_call_operand.vmem [shape: f32[2,1024], index: 0, kind: input, shape index: {}]   ;;  %s1376_s1 = inlined_call_operand.hbm [shape: f32[1024,256], index: 1, kind: input, shape index: {}]   ;;  %s1377_s2 = inlined_call_operand.vmem [shape: f32[2,256], index: 2, kind: input, shape index: {}]   ;;  %s1378_s3 = inlined_call_operand.hbm [shape: f32[256,256], index: 3, kind: input, shape index: {}]   ;;  %s1379_s4 = inlined_call_operand.vmem [shape: f32[1,256], index: 4, kind: input, shape index: {}]   ;;  %s1380_s5 = inlined_call_operand.hbm [shape: f32[256,128], index: 5, kind: input, shape index: {}]   ;;  %s1381_s6 = inlined_call_operand.vmem [shape: f32[1,128], index: 6, kind: input, shape index: {}]   ;;  %s1382_s7 = inlined_call_operand.vmem [shape: f32[128,64], index: 7, kind: input, shape index: {}]   ;;  %s1383_s8 = inlined_call_operand.vmem [shape: f32[1,64], index: 8, kind: input, shape index: {}]   ;;  %s1384_s9 = inlined_call_operand.vmem [shape: f32[64,128], index: 9, kind: input, shape index: {}]   ;;  %s1385_s10 = inlined_call_operand.vmem [shape: f32[1,128], index: 10, kind: input, shape index: {}]   ;;  %s1386_s11 = inlined_call_operand.hbm [shape: f32[2,128], index: 11, kind: output, shape index: {}]  }
   0x1   :  { %17 = vsyncpa [#allocation7], 0 }
   0x2   :  { %18 = vsyncpa [#allocation5], 0  ;;  %s40_s19 = sshll.u32 %s1378_s3, 4  ;;  %s1160_s20 = smov [#allocation6]   ;;  %s41_s19 = int_to_ptr.hbm [resolvable:$true] %s40_s19 }
   0x3   :  { %s42_s21 = sshll.u32 %s1160_s20, 4  ;;  %s25_s24 = sshll.u32 %s1376_s1, 4  ;;  %s43_s21 = int_to_ptr.vmem [resolvable:$true] %s42_s21  ;;  %s26_s24 = int_to_ptr.hbm [resolvable:$true] %s25_s24 }
   0x4   :  { %s1161_s25 = smov 256   ;;  %s1162_s26 = smov 16  }
   0x5   :  { %48 = dma.hbm_to_vmem [thread:$0]  %s41_s19, 8192, %s43_s21, [#allocation7], %s1161_s25, %s1161_s25, %s1162_s26  }
   0x6   :  { %s1163_s27 = smov [#allocation3]   ;;  %s55_s12 = sshll.u32 %s1380_s5, 4  ;;  %s56_s12 = int_to_ptr.hbm [resolvable:$true] %s55_s12 }
   0x7   :  { %s27_s28 = sshll.u32 %s1163_s27, 4  ;;  %s1164_s3 = smov [#allocation8]   ;;  %s28_s28 = int_to_ptr.vmem [resolvable:$true] %s27_s28 }
   0x8   :  { %33 = dma.hbm_to_vmem [thread:$0]  %s26_s24, 32768, %s28_s28, [#allocation4], %s1161_s25, %s1161_s25, %s1162_s26  }
   0x9   :  { %s57_s13 = sshll.u32 %s1164_s3, 4  ;;  %s1165_s14 = smov 128   ;;  %s58_s13 = int_to_ptr.vmem [resolvable:$true] %s57_s13 }
   0xa   :  { %s1166_s15 = smov 8  }
   0xb   :  { %63 = dma.hbm_to_vmem [thread:$0]  %s56_s12, 4096, %s58_s13, [#allocation7], %s1165_s14, %s1165_s14, %s1166_s15  }
   0xc   :  { %1154 = dma.done.wait [#allocation4], 32768  }
   0xd   :  { %1155 = vsyncadd [#allocation4], 4294934528 }
   0xe   :  { %1156 = dma.done.wait [#allocation7], 12288  }
   0xf   :  { %1157 = vsyncadd [#allocation7], 4294955008  ;;  %v121_v0 = vld [vmem:[#allocation6 + $0xf0] sm:$0xff]  ;;  %v122_v1 = vld [vmem:[#allocation6 + $0xf8] sm:$0xff]  ;;  %vm250_vm0 = vcmask 1041408   ;;  %vm1003_vm1 = vcmask 523264  }
  0x10   :  { %v119_v2 = vld [vmem:[#allocation6 + $0xe0] sm:$0xff]  ;;  %167 = vmatpush.msra.mxu0 %v121_v0  ;;  %207 = vmatpush.msra.mxu2 %v122_v1  ;;  %v153_v3 = vld [vmem:[#allocation6 + $0x1f0] sm:$0xff]  ;;  %v120_v4 = vld [vmem:[#allocation6 + $0xe8] sm:$0xff]  ;;  %s1167_s21 = smov [#allocation9]  }
  0x11   :  { %v154_v5 = vld [vmem:[#allocation6 + $0x1f8] sm:$0xff]  ;;  %187 = vmatpush.msra.mxu1 %v153_v3  ;;  %v117_v6 = vld [vmem:[#allocation6 + $0xd0] sm:$0xff]  ;;  %v151_v7 = vld [vmem:[#allocation6 + $0x1e0] sm:$0xff]  ;;  %s1033_s22 = sshll.u32 %s1167_s21, 4  ;;  %s1034_s22 = int_to_ptr.vmem [resolvable:$true] %s1033_s22 }
  0x12   :  { %227 = vmatpush.msra.mxu3 %v154_v5  ;;  %v118_v8 = vld [vmem:[#allocation6 + $0xd8] sm:$0xff]  ;;  %168 = vmatpush.msra.mxu0 %v119_v2  ;;  %v152_v9 = vld [vmem:[#allocation6 + $0x1e8] sm:$0xff]  ;;  %v149_v10 = vld [vmem:[#allocation6 + $0x1d0] sm:$0xff] }
  0x13   :  { %208 = vmatpush.msra.mxu2 %v120_v4  ;;  %188 = vmatpush.msra.mxu1 %v151_v7  ;;  %v115_v11 = vld [vmem:[#allocation6 + $0xc0] sm:$0xff]  ;;  %v116_v12 = vld [vmem:[#allocation6 + $0xc8] sm:$0xff]  ;;  %v150_v13 = vld [vmem:[#allocation6 + $0x1d8] sm:$0xff] }
  0x14   :  { %228 = vmatpush.msra.mxu3 %v152_v9  ;;  %169 = vmatpush.msra.mxu0 %v117_v6  ;;  %v147_v14 = vld [vmem:[#allocation6 + $0x1c0] sm:$0xff]  ;;  %v148_v15 = vld [vmem:[#allocation6 + $0x1c8] sm:$0xff]  ;;  %v113_v16 = vld [vmem:[#allocation6 + $0xb0] sm:$0xff] }
  0x15   :  { %209 = vmatpush.msra.mxu2 %v118_v8  ;;  %189 = vmatpush.msra.mxu1 %v149_v10  ;;  %v114_v17 = vld [vmem:[#allocation6 + $0xb8] sm:$0xff]  ;;  %v145_v18 = vld [vmem:[#allocation6 + $0x1b0] sm:$0xff]  ;;  %v111_v20 = vld [vmem:[#allocation6 + $0xa0] sm:$0xff] }
  0x16   :  { %229 = vmatpush.msra.mxu3 %v150_v13  ;;  %170 = vmatpush.msra.mxu0 %v115_v11  ;;  %v146_v19 = vld [vmem:[#allocation6 + $0x1b8] sm:$0xff]  ;;  %v112_v21 = vld [vmem:[#allocation6 + $0xa8] sm:$0xff]  ;;  %v143_v22 = vld [vmem:[#allocation6 + $0x1a0] sm:$0xff] }
  0x17   :  { %210 = vmatpush.msra.mxu2 %v116_v12  ;;  %190 = vmatpush.msra.mxu1 %v147_v14  ;;  %v144_v23 = vld [vmem:[#allocation6 + $0x1a8] sm:$0xff]  ;;  %v109_v24 = vld [vmem:[#allocation6 + $0x90] sm:$0xff]  ;;  %v110_v25 = vld [vmem:[#allocation6 + $0x98] sm:$0xff] }
  0x18   :  { %230 = vmatpush.msra.mxu3 %v148_v15  ;;  %171 = vmatpush.msra.mxu0 %v113_v16  ;;  %v141_v26 = vld [vmem:[#allocation6 + $0x190] sm:$0xff]  ;;  %v142_v27 = vld [vmem:[#allocation6 + $0x198] sm:$0xff]  ;;  %v107_v28 = vld [vmem:[#allocation6 + $0x80] sm:$0xff] }
  0x19   :  { %211 = vmatpush.msra.mxu2 %v114_v17  ;;  %191 = vmatpush.msra.mxu1 %v145_v18  ;;  %v108_v29 = vld [vmem:[#allocation6 + $0x88] sm:$0xff]  ;;  %v139_v30 = vld [vmem:[#allocation6 + $0x180] sm:$0xff]  ;;  %v105_v32 = vld [vmem:[#allocation6 + $0x70] sm:$0xff] }
  0x1a   :  { %231 = vmatpush.msra.mxu3 %v146_v19  ;;  %172 = vmatpush.msra.mxu0 %v111_v20  ;;  %v140_v31 = vld [vmem:[#allocation6 + $0x188] sm:$0xff]  ;;  %v106_v33 = vld [vmem:[#allocation6 + $0x78] sm:$0xff]  ;;  %v137_v34 = vld [vmem:[#allocation6 + $0x170] sm:$0xff] }
  0x1b   :  { %212 = vmatpush.msra.mxu2 %v112_v21  ;;  %192 = vmatpush.msra.mxu1 %v143_v22  ;;  %v138_v35 = vld [vmem:[#allocation6 + $0x178] sm:$0xff]  ;;  %v103_v36 = vld [vmem:[#allocation6 + $0x60] sm:$0xff]  ;;  %v104_v37 = vld [vmem:[#allocation6 + $0x68] sm:$0xff] }
  0x1c   :  { %232 = vmatpush.msra.mxu3 %v144_v23  ;;  %173 = vmatpush.msra.mxu0 %v109_v24  ;;  %v135_v38 = vld [vmem:[#allocation6 + $0x160] sm:$0xff]  ;;  %v136_v39 = vld [vmem:[#allocation6 + $0x168] sm:$0xff]  ;;  %v101_v40 = vld [vmem:[#allocation6 + $0x50] sm:$0xff] }
  0x1d   :  { %213 = vmatpush.msra.mxu2 %v110_v25  ;;  %193 = vmatpush.msra.mxu1 %v141_v26  ;;  %v102_v41 = vld [vmem:[#allocation6 + $0x58] sm:$0xff]  ;;  %v133_v42 = vld [vmem:[#allocation6 + $0x150] sm:$0xff]  ;;  %v99_v44 = vld [vmem:[#allocation6 + $0x40] sm:$0xff] }
  0x1e   :  { %233 = vmatpush.msra.mxu3 %v142_v27  ;;  %174 = vmatpush.msra.mxu0 %v107_v28  ;;  %v134_v43 = vld [vmem:[#allocation6 + $0x158] sm:$0xff]  ;;  %v100_v45 = vld [vmem:[#allocation6 + $0x48] sm:$0xff]  ;;  %v131_v46 = vld [vmem:[#allocation6 + $0x140] sm:$0xff] }
  0x1f   :  { %214 = vmatpush.msra.mxu2 %v108_v29  ;;  %194 = vmatpush.msra.mxu1 %v139_v30  ;;  %v132_v47 = vld [vmem:[#allocation6 + $0x148] sm:$0xff]  ;;  %v97_v48 = vld [vmem:[#allocation6 + $0x30] sm:$0xff]  ;;  %v98_v49 = vld [vmem:[#allocation6 + $0x38] sm:$0xff] }
  0x20   :  { %234 = vmatpush.msra.mxu3 %v140_v31  ;;  %175 = vmatpush.msra.mxu0 %v105_v32  ;;  %v129_v50 = vld [vmem:[#allocation6 + $0x130] sm:$0xff]  ;;  %v130_v51 = vld [vmem:[#allocation6 + $0x138] sm:$0xff]  ;;  %v95_v52 = vld [vmem:[#allocation6 + $0x20] sm:$0xff] }
  0x21   :  { %215 = vmatpush.msra.mxu2 %v106_v33  ;;  %195 = vmatpush.msra.mxu1 %v137_v34  ;;  %v96_v53 = vld [vmem:[#allocation6 + $0x28] sm:$0xff]  ;;  %v127_v54 = vld [vmem:[#allocation6 + $0x120] sm:$0xff]  ;;  %v93_v56 = vld [vmem:[#allocation6 + $0x10] sm:$0xff] }
  0x22   :  { %235 = vmatpush.msra.mxu3 %v138_v35  ;;  %176 = vmatpush.msra.mxu0 %v103_v36  ;;  %v128_v55 = vld [vmem:[#allocation6 + $0x128] sm:$0xff]  ;;  %v94_v57 = vld [vmem:[#allocation6 + $0x18] sm:$0xff]  ;;  %v125_v58 = vld [vmem:[#allocation6 + $0x110] sm:$0xff] }
  0x23   :  { %216 = vmatpush.msra.mxu2 %v104_v37  ;;  %196 = vmatpush.msra.mxu1 %v135_v38  ;;  %v126_v59 = vld [vmem:[#allocation6 + $0x118] sm:$0xff]  ;;  %v91_v60 = vld [vmem:[#allocation6] sm:$0xff]  ;;  %v92_v61 = vld [vmem:[#allocation6 + $0x8] sm:$0xff] }
  0x24   :  { %236 = vmatpush.msra.mxu3 %v136_v39  ;;  %177 = vmatpush.msra.mxu0 %v101_v40  ;;  %v287_v62 = vld [vmem:[#allocation3 + $0xf0] sm:$0xff]  ;;  %v123_v0 = vld [vmem:[#allocation6 + $0x100] sm:$0xff]  ;;  %v124_v1 = vld [vmem:[#allocation6 + $0x108] sm:$0xff] }
  0x25   :  { %217 = vmatpush.msra.mxu2 %v102_v41  ;;  %197 = vmatpush.msra.mxu1 %v133_v42  ;;  %v351_v63 = vld [vmem:[#allocation3 + $0x2f0] sm:$0xff]  ;;  %v285_v2 = vld [vmem:[#allocation3 + $0xe0] sm:$0xff] }
  0x26   :  { %237 = vmatpush.msra.mxu3 %v134_v43  ;;  %178 = vmatpush.msra.mxu0 %v99_v44  ;;  %v319_v3 = vld [vmem:[#allocation3 + $0x1f0] sm:$0xff]  ;;  %v349_v4 = vld [vmem:[#allocation3 + $0x2e0] sm:$0xff] }
  0x27   :  { %218 = vmatpush.msra.mxu2 %v100_v45  ;;  %198 = vmatpush.msra.mxu1 %v131_v46  ;;  %v383_v5 = vld [vmem:[#allocation3 + $0x3f0] sm:$0xff]  ;;  %v317_v7 = vld [vmem:[#allocation3 + $0x1e0] sm:$0xff] }
  0x28   :  { %238 = vmatpush.msra.mxu3 %v132_v47  ;;  %179 = vmatpush.msra.mxu0 %v97_v48  ;;  %v283_v6 = vld [vmem:[#allocation3 + $0xd0] sm:$0xff]  ;;  %v381_v9 = vld [vmem:[#allocation3 + $0x3e0] sm:$0xff] }
  0x29   :  { %219 = vmatpush.msra.mxu2 %v98_v49  ;;  %199 = vmatpush.msra.mxu1 %v129_v50  ;;  %v347_v8 = vld [vmem:[#allocation3 + $0x2d0] sm:$0xff]  ;;  %v281_v10 = vld [vmem:[#allocation3 + $0xc0] sm:$0xff] }
  0x2a   :  { %239 = vmatpush.msra.mxu3 %v130_v51  ;;  %180 = vmatpush.msra.mxu0 %v95_v52  ;;  %v315_v11 = vld [vmem:[#allocation3 + $0x1d0] sm:$0xff]  ;;  %v345_v12 = vld [vmem:[#allocation3 + $0x2c0] sm:$0xff] }
  0x2b   :  { %220 = vmatpush.msra.mxu2 %v96_v53  ;;  %200 = vmatpush.msra.mxu1 %v127_v54  ;;  %v379_v13 = vld [vmem:[#allocation3 + $0x3d0] sm:$0xff]  ;;  %v313_v15 = vld [vmem:[#allocation3 + $0x1c0] sm:$0xff] }
  0x2c   :  { %240 = vmatpush.msra.mxu3 %v128_v55  ;;  %181 = vmatpush.msra.mxu0 %v93_v56  ;;  %v279_v14 = vld [vmem:[#allocation3 + $0xb0] sm:$0xff]  ;;  %v377_v17 = vld [vmem:[#allocation3 + $0x3c0] sm:$0xff] }
  0x2d   :  { %221 = vmatpush.msra.mxu2 %v94_v57  ;;  %201 = vmatpush.msra.mxu1 %v125_v58  ;;  %v343_v16 = vld [vmem:[#allocation3 + $0x2b0] sm:$0xff]  ;;  %v277_v19 = vld [vmem:[#allocation3 + $0xa0] sm:$0xff] }
  0x2e   :  { %241 = vmatpush.msra.mxu3 %v126_v59  ;;  %182 = vmatpush.msra.mxu0 %v91_v60  ;;  %v90_v18 = vld [vmem:[%s1377_s2] sm:$0xf]  ;;  %v341_v21 = vld [vmem:[#allocation3 + $0x2a0] sm:$0xff] }
  0x2f   :  { %222 = vmatpush.msra.mxu2 %v92_v61  ;;  %202 = vmatpush.msra.mxu1 %v123_v0  ;;  %v311_v20 = vld [vmem:[#allocation3 + $0x1b0] sm:$0xff]  ;;  %162 = vst [vmem:[#allocation1] ss:$4 sm:$0xff] %v90_v18  ;;  %v309_v24 = vld [vmem:[#allocation3 + $0x1a0] sm:$0xff] }
  0x30   :  { %534 = vmatpush.msrb.mxu0 %v287_v62  ;;  %242 = vmatpush.msra.mxu3 %v124_v1  ;;  %v375_v22 = vld [vmem:[#allocation3 + $0x3b0] sm:$0xff]  ;;  %v373_v26 = vld [vmem:[#allocation3 + $0x3a0] sm:$0xff] }
  0x31   :  { %574 = vmatpush.msrb.mxu2 %v351_v63  ;;  %554 = vmatpush.msrb.mxu1 %v319_v3  ;;  %v275_v23 = vld [vmem:[#allocation3 + $0x90] sm:$0xff]  ;;  %v273_v27 = vld [vmem:[#allocation3 + $0x80] sm:$0xff] }
  0x32   :  { %535 = vmatpush.msrb.mxu0 %v285_v2  ;;  %594 = vmatpush.msrb.mxu3 %v383_v5  ;;  %v339_v25 = vld [vmem:[#allocation3 + $0x290] sm:$0xff]  ;;  %v337_v29 = vld [vmem:[#allocation3 + $0x280] sm:$0xff] }
  0x33   :  { %575 = vmatpush.msrb.mxu2 %v349_v4  ;;  %555 = vmatpush.msrb.mxu1 %v317_v7  ;;  %v307_v28 = vld [vmem:[#allocation3 + $0x190] sm:$0xff]  ;;  %v305_v33 = vld [vmem:[#allocation3 + $0x180] sm:$0xff] }
  0x34   :  { %536 = vmatpush.msrb.mxu0 %v283_v6  ;;  %595 = vmatpush.msrb.mxu3 %v381_v9  ;;  %v371_v30 = vld [vmem:[#allocation3 + $0x390] sm:$0xff]  ;;  %v369_v35 = vld [vmem:[#allocation3 + $0x380] sm:$0xff] }
  0x35   :  { %576 = vmatpush.msrb.mxu2 %v347_v8  ;;  %556 = vmatpush.msrb.mxu1 %v315_v11  ;;  %v271_v31 = vld [vmem:[#allocation3 + $0x70] sm:$0xff]  ;;  %v269_v38 = vld [vmem:[#allocation3 + $0x60] sm:$0xff] }
  0x36   :  { %537 = vmatpush.msrb.mxu0 %v281_v10  ;;  %596 = vmatpush.msrb.mxu3 %v379_v13  ;;  %v255_v32 = vld [vmem:[%s1375_s0] sm:$0xff]  ;;  %v1245_v37 = vld.sshfl [vmem:[#allocation1 + $0x8] sm:$0xff pattern:$0x73625140] }
  0x37   :  { %577 = vmatpush.msrb.mxu2 %v345_v12  ;;  %557 = vmatpush.msrb.mxu1 %v313_v15  ;;  %v335_v34 = vld [vmem:[#allocation3 + $0x270] sm:$0xff]  ;;  %v333_v40 = vld [vmem:[#allocation3 + $0x260] sm:$0xff] }
  0x38   :  { %538 = vmatpush.msrb.mxu0 %v279_v14  ;;  %597 = vmatpush.msrb.mxu3 %v377_v17  ;;  %v1243_v36 = vld.sshfl [vmem:[#allocation1] sm:$0xff pattern:$0x73625140]  ;;  %v301_v43 = vld [vmem:[#allocation3 + $0x160] sm:$0xff] }
  0x39   :  { %578 = vmatpush.msrb.mxu2 %v343_v16  ;;  %558 = vmatpush.msrb.mxu1 %v311_v20  ;;  %v303_v39 = vld [vmem:[#allocation3 + $0x170] sm:$0xff]  ;;  %515 = vst [vmem:[#allocation1] ss:$4 sm:$0xff] %v255_v32  ;;  %v365_v45 = vld [vmem:[#allocation3 + $0x360] sm:$0xff] }
  0x3a   :  { %539 = vmatpush.msrb.mxu0 %v277_v19  ;;  %598 = vmatpush.msrb.mxu3 %v375_v22  ;;  %v367_v41 = vld [vmem:[#allocation3 + $0x370] sm:$0xff]  ;;  %v265_v46 = vld [vmem:[#allocation3 + $0x40] sm:$0xff] }
  0x3b   :  { %579 = vmatpush.msrb.mxu2 %v341_v21  ;;  %559 = vmatpush.msrb.mxu1 %v309_v24  ;;  %v267_v42 = vld [vmem:[#allocation3 + $0x50] sm:$0xff]  ;;  %v329_v48 = vld [vmem:[#allocation3 + $0x240] sm:$0xff] }
  0x3c   :  { %540 = vmatpush.msrb.mxu0 %v275_v23  ;;  %599 = vmatpush.msrb.mxu3 %v373_v26  ;;  %v331_v44 = vld [vmem:[#allocation3 + $0x250] sm:$0xff]  ;;  %v297_v51 = vld [vmem:[#allocation3 + $0x140] sm:$0xff] }
  0x3d   :  { %580 = vmatpush.msrb.mxu2 %v339_v25  ;;  %560 = vmatpush.msrb.mxu1 %v307_v28  ;;  %v299_v47 = vld [vmem:[#allocation3 + $0x150] sm:$0xff]  ;;  %v361_v53 = vld [vmem:[#allocation3 + $0x340] sm:$0xff] }
  0x3e   :  { %541 = vmatpush.msrb.mxu0 %v273_v27  ;;  %600 = vmatpush.msrb.mxu3 %v371_v30  ;;  %v363_v49 = vld [vmem:[#allocation3 + $0x350] sm:$0xff]  ;;  %v261_v54 = vld [vmem:[#allocation3 + $0x20] sm:$0xff] }
  0x3f   :  { %581 = vmatpush.msrb.mxu2 %v337_v29  ;;  %561 = vmatpush.msrb.mxu1 %v305_v33  ;;  %v263_v50 = vld [vmem:[#allocation3 + $0x30] sm:$0xff]  ;;  %v325_v56 = vld [vmem:[#allocation3 + $0x220] sm:$0xff] }
  0x40   :  { %542 = vmatpush.msrb.mxu0 %v271_v31  ;;  %601 = vmatpush.msrb.mxu3 %v369_v35  ;;  %v327_v52 = vld [vmem:[#allocation3 + $0x230] sm:$0xff]  ;;  %v293_v59 = vld [vmem:[#allocation3 + $0x120] sm:$0xff] }
  0x41   :  { %582 = vmatpush.msrb.mxu2 %v335_v34  ;;  %562 = vmatpush.msrb.mxu1 %v303_v39  ;;  %v295_v55 = vld [vmem:[#allocation3 + $0x130] sm:$0xff]  ;;  %v357_v61 = vld [vmem:[#allocation3 + $0x320] sm:$0xff] }
  0x42   :  { %543 = vmatpush.msrb.mxu0 %v269_v38  ;;  %602 = vmatpush.msrb.mxu3 %v367_v41  ;;  %v359_v57 = vld [vmem:[#allocation3 + $0x330] sm:$0xff]  ;;  %v257_v62 = vld [vmem:[#allocation3] sm:$0xff] }
  0x43   :  { %583 = vmatpush.msrb.mxu2 %v333_v40  ;;  %563 = vmatpush.msrb.mxu1 %v301_v43  ;;  %v259_v58 = vld [vmem:[#allocation3 + $0x10] sm:$0xff]  ;;  %v321_v0 = vld [vmem:[#allocation3 + $0x200] sm:$0xff] }
  0x44   :  { %544 = vmatpush.msrb.mxu0 %v267_v42  ;;  %603 = vmatpush.msrb.mxu3 %v365_v45  ;;  %v323_v60 = vld [vmem:[#allocation3 + $0x210] sm:$0xff]  ;;  %v289_v4 = vld [vmem:[#allocation3 + $0x100] sm:$0xff] }
  0x45   :  { %584 = vmatpush.msrb.mxu2 %v331_v44  ;;  %564 = vmatpush.msrb.mxu1 %v299_v47  ;;  %v291_v63 = vld [vmem:[#allocation3 + $0x110] sm:$0xff]  ;;  %v353_v5 = vld [vmem:[#allocation3 + $0x300] sm:$0xff] }
  0x46   :  { %545 = vmatpush.msrb.mxu0 %v265_v46  ;;  %604 = vmatpush.msrb.mxu3 %v363_v49  ;;  %v355_v1 = vld [vmem:[#allocation3 + $0x310] sm:$0xff]  ;;  %v413_v6 = vld [vmem:[#allocation3 + $0x4e0] sm:$0xff] }
  0x47   :  { %585 = vmatpush.msrb.mxu2 %v329_v48  ;;  %565 = vmatpush.msrb.mxu1 %v297_v51  ;;  %v479_v2 = vld [vmem:[#allocation3 + $0x6f0] sm:$0xff]  ;;  %v477_v8 = vld [vmem:[#allocation3 + $0x6e0] sm:$0xff] }
  0x48   :  { %546 = vmatpush.msrb.mxu0 %v263_v50  ;;  %605 = vmatpush.msrb.mxu3 %v361_v53  ;;  %v415_v3 = vld [vmem:[#allocation3 + $0x4f0] sm:$0xff]  ;;  %v445_v11 = vld [vmem:[#allocation3 + $0x5e0] sm:$0xff] }
  0x49   :  { %586 = vmatpush.msrb.mxu2 %v327_v52  ;;  %566 = vmatpush.msrb.mxu1 %v295_v55  ;;  %v447_v7 = vld [vmem:[#allocation3 + $0x5f0] sm:$0xff]  ;;  %v256_v12 = vld [vmem:[%s1375_s0 + $0x8] sm:$0xff] }
  0x4a   :  { %223 = vmatmul.f32.vlgmr.msra.gmra.mxu2 %v1243_v36  ;;  %547 = vmatpush.msrb.mxu0 %v261_v54  ;;  %v511_v9 = vld [vmem:[#allocation3 + $0x7f0] sm:$0xff]  ;;  %v509_v14 = vld [vmem:[#allocation3 + $0x7e0] sm:$0xff]  ;;  %517 = vst [vmem:[#allocation1 + $0x20] ss:$4 sm:$0xff] %v256_v12  ;;  %v320_v12 = vld [vmem:[#allocation3 + $0x1f8] sm:$0xff] }
  0x4b   :  { %587 = vmatpush.msrb.mxu2 %v325_v56  ;;  %606 = vmatpush.msrb.mxu3 %v359_v57  ;;  %v411_v10 = vld [vmem:[#allocation3 + $0x4d0] sm:$0xff]  ;;  %v409_v15 = vld [vmem:[#allocation3 + $0x4c0] sm:$0xff] }
  0x4c   :  { %548 = vmatpush.msrb.mxu0 %v259_v58  ;;  %243 = vmatmul.f32.vlgmr.msra.gmra.mxu3 %v1245_v37  ;;  %v475_v13 = vld [vmem:[#allocation3 + $0x6d0] sm:$0xff]  ;;  %v473_v17 = vld [vmem:[#allocation3 + $0x6c0] sm:$0xff] }
  0x4d   :  { %567 = vmatpush.msrb.mxu1 %v293_v59  ;;  %588 = vmatpush.msrb.mxu2 %v323_v60  ;;  %v443_v16 = vld [vmem:[#allocation3 + $0x5d0] sm:$0xff]  ;;  %v441_v20 = vld [vmem:[#allocation3 + $0x5c0] sm:$0xff] }
  0x4e   :  { %607 = vmatpush.msrb.mxu3 %v357_v61  ;;  %549 = vmatpush.msrb.mxu0 %v257_v62  ;;  %v507_v18 = vld [vmem:[#allocation3 + $0x7d0] sm:$0xff]  ;;  %v505_v22 = vld [vmem:[#allocation3 + $0x7c0] sm:$0xff] }
  0x4f   :  { %568 = vmatpush.msrb.mxu1 %v291_v63  ;;  %589 = vmatpush.msrb.mxu2 %v321_v0  ;;  %v407_v19 = vld [vmem:[#allocation3 + $0x4b0] sm:$0xff]  ;;  %v405_v23 = vld [vmem:[#allocation3 + $0x4a0] sm:$0xff] }
  0x50   :  { %608 = vmatpush.msrb.mxu3 %v355_v1  ;;  %183 = vmatmul.f32.vlgmr.msra.gmra.mxu0 %v1243_v36  ;;  %v471_v21 = vld [vmem:[#allocation3 + $0x6b0] sm:$0xff]  ;;  %v469_v25 = vld [vmem:[#allocation3 + $0x6a0] sm:$0xff] }
  0x51   :  { %654 = vmatpush.msra.mxu2 %v479_v2  ;;  %614 = vmatpush.msra.mxu0 %v415_v3  ;;  %v439_v24 = vld [vmem:[#allocation3 + $0x5b0] sm:$0xff]  ;;  %v437_v28 = vld [vmem:[#allocation3 + $0x5a0] sm:$0xff] }
  0x52   :  { %569 = vmatpush.msrb.mxu1 %v289_v4  ;;  %609 = vmatpush.msrb.mxu3 %v353_v5  ;;  %v503_v26 = vld [vmem:[#allocation3 + $0x7b0] sm:$0xff]  ;;  %v501_v30 = vld [vmem:[#allocation3 + $0x7a0] sm:$0xff] }
  0x53   :  { %203 = vmatmul.f32.vlgmr.msra.gmra.mxu1 %v1245_v37  ;;  %615 = vmatpush.msra.mxu0 %v413_v6  ;;  %v403_v27 = vld [vmem:[#allocation3 + $0x490] sm:$0xff]  ;;  %v401_v31 = vld [vmem:[#allocation3 + $0x480] sm:$0xff]  ;;  %v288_v6 = vld [vmem:[#allocation3 + $0xf8] sm:$0xff] }
  0x54   :  { %634 = vmatpush.msra.mxu1 %v447_v7  ;;  %655 = vmatpush.msra.mxu2 %v477_v8  ;;  %v467_v29 = vld [vmem:[#allocation3 + $0x690] sm:$0xff]  ;;  %v465_v33 = vld [vmem:[#allocation3 + $0x680] sm:$0xff]  ;;  %v352_v7 = vld [vmem:[#allocation3 + $0x2f8] sm:$0xff] }
  0x55   :  { %674 = vmatpush.msra.mxu3 %v511_v9  ;;  %616 = vmatpush.msra.mxu0 %v411_v10  ;;  %v435_v32 = vld [vmem:[#allocation3 + $0x590] sm:$0xff]  ;;  %v433_v36 = vld [vmem:[#allocation3 + $0x580] sm:$0xff] }
  0x56   :  { %635 = vmatpush.msra.mxu1 %v445_v11  ;;  %656 = vmatpush.msra.mxu2 %v475_v13  ;;  %v499_v34 = vld [vmem:[#allocation3 + $0x790] sm:$0xff]  ;;  %v497_v38 = vld [vmem:[#allocation3 + $0x780] sm:$0xff]  ;;  %v286_v11 = vld [vmem:[#allocation3 + $0xe8] sm:$0xff] }
  0x57   :  { %675 = vmatpush.msra.mxu3 %v509_v14  ;;  %617 = vmatpush.msra.mxu0 %v409_v15  ;;  %v399_v35 = vld [vmem:[#allocation3 + $0x470] sm:$0xff]  ;;  %v397_v39 = vld [vmem:[#allocation3 + $0x460] sm:$0xff]  ;;  %v350_v13 = vld [vmem:[#allocation3 + $0x2e8] sm:$0xff] }
  0x58   :  { %636 = vmatpush.msra.mxu1 %v443_v16  ;;  %657 = vmatpush.msra.mxu2 %v473_v17  ;;  %v463_v37 = vld [vmem:[#allocation3 + $0x670] sm:$0xff]  ;;  %v461_v41 = vld [vmem:[#allocation3 + $0x660] sm:$0xff]  ;;  %v384_v14 = vld [vmem:[#allocation3 + $0x3f8] sm:$0xff] }
  0x59   :  { %676 = vmatpush.msra.mxu3 %v507_v18  ;;  %618 = vmatpush.msra.mxu0 %v407_v19  ;;  %v431_v40 = vld [vmem:[#allocation3 + $0x570] sm:$0xff]  ;;  %v429_v44 = vld [vmem:[#allocation3 + $0x560] sm:$0xff]  ;;  %v284_v15 = vld [vmem:[#allocation3 + $0xd8] sm:$0xff] }
  0x5a   :  { %637 = vmatpush.msra.mxu1 %v441_v20  ;;  %658 = vmatpush.msra.mxu2 %v471_v21  ;;  %v495_v42 = vld [vmem:[#allocation3 + $0x770] sm:$0xff]  ;;  %v493_v46 = vld [vmem:[#allocation3 + $0x760] sm:$0xff]  ;;  %v318_v16 = vld [vmem:[#allocation3 + $0x1e8] sm:$0xff] }
  0x5b   :  { %677 = vmatpush.msra.mxu3 %v505_v22  ;;  %619 = vmatpush.msra.mxu0 %v405_v23  ;;  %v395_v43 = vld [vmem:[#allocation3 + $0x450] sm:$0xff]  ;;  %v393_v47 = vld [vmem:[#allocation3 + $0x440] sm:$0xff]  ;;  %v348_v17 = vld [vmem:[#allocation3 + $0x2d8] sm:$0xff] }
  0x5c   :  { %638 = vmatpush.msra.mxu1 %v439_v24  ;;  %659 = vmatpush.msra.mxu2 %v469_v25  ;;  %v459_v45 = vld [vmem:[#allocation3 + $0x650] sm:$0xff]  ;;  %v457_v49 = vld [vmem:[#allocation3 + $0x640] sm:$0xff]  ;;  %v382_v18 = vld [vmem:[#allocation3 + $0x3e8] sm:$0xff] }
  0x5d   :  { %678 = vmatpush.msra.mxu3 %v503_v26  ;;  %620 = vmatpush.msra.mxu0 %v403_v27  ;;  %v427_v48 = vld [vmem:[#allocation3 + $0x550] sm:$0xff]  ;;  %v425_v52 = vld [vmem:[#allocation3 + $0x540] sm:$0xff]  ;;  %v282_v20 = vld [vmem:[#allocation3 + $0xc8] sm:$0xff] }
  0x5e   :  { %639 = vmatpush.msra.mxu1 %v437_v28  ;;  %660 = vmatpush.msra.mxu2 %v467_v29  ;;  %v491_v50 = vld [vmem:[#allocation3 + $0x750] sm:$0xff]  ;;  %v489_v54 = vld [vmem:[#allocation3 + $0x740] sm:$0xff]  ;;  %v316_v21 = vld [vmem:[#allocation3 + $0x1d8] sm:$0xff] }
  0x5f   :  { %679 = vmatpush.msra.mxu3 %v501_v30  ;;  %621 = vmatpush.msra.mxu0 %v401_v31  ;;  %v391_v51 = vld [vmem:[#allocation3 + $0x430] sm:$0xff]  ;;  %v389_v55 = vld [vmem:[#allocation3 + $0x420] sm:$0xff]  ;;  %v346_v22 = vld [vmem:[#allocation3 + $0x2c8] sm:$0xff] }
  0x60   :  { %640 = vmatpush.msra.mxu1 %v435_v32  ;;  %661 = vmatpush.msra.mxu2 %v465_v33  ;;  %v455_v53 = vld [vmem:[#allocation3 + $0x630] sm:$0xff]  ;;  %v453_v57 = vld [vmem:[#allocation3 + $0x620] sm:$0xff]  ;;  %v380_v23 = vld [vmem:[#allocation3 + $0x3d8] sm:$0xff] }
  0x61   :  { %680 = vmatpush.msra.mxu3 %v499_v34  ;;  %622 = vmatpush.msra.mxu0 %v399_v35  ;;  %v423_v56 = vld [vmem:[#allocation3 + $0x530] sm:$0xff]  ;;  %v421_v60 = vld [vmem:[#allocation3 + $0x520] sm:$0xff]  ;;  %v280_v26 = vld [vmem:[#allocation3 + $0xb8] sm:$0xff] }
  0x62   :  { %641 = vmatpush.msra.mxu1 %v433_v36  ;;  %662 = vmatpush.msra.mxu2 %v463_v37  ;;  %v487_v58 = vld [vmem:[#allocation3 + $0x730] sm:$0xff]  ;;  %v485_v62 = vld [vmem:[#allocation3 + $0x720] sm:$0xff]  ;;  %v314_v27 = vld [vmem:[#allocation3 + $0x1c8] sm:$0xff] }
  0x63   :  { %681 = vmatpush.msra.mxu3 %v497_v38  ;;  %623 = vmatpush.msra.mxu0 %v397_v39  ;;  %v387_v59 = vld [vmem:[#allocation3 + $0x410] sm:$0xff]  ;;  %v1254_v63 = vld.sshfl [vmem:[#allocation1 + $0x10] sm:$0xff pattern:$0x73625140]  ;;  %v344_v28 = vld [vmem:[#allocation3 + $0x2b8] sm:$0xff] }
  0x64   :  { %642 = vmatpush.msra.mxu1 %v431_v40  ;;  %663 = vmatpush.msra.mxu2 %v461_v41  ;;  %v451_v61 = vld [vmem:[#allocation3 + $0x610] sm:$0xff]  ;;  %v385_v0 = vld [vmem:[#allocation3 + $0x400] sm:$0xff]  ;;  %v378_v29 = vld [vmem:[#allocation3 + $0x3c8] sm:$0xff] }
  0x65   :  { %682 = vmatpush.msra.mxu3 %v495_v42  ;;  %624 = vmatpush.msra.mxu0 %v395_v43  ;;  %v419_v1 = vld [vmem:[#allocation3 + $0x510] sm:$0xff]  ;;  %v449_v2 = vld [vmem:[#allocation3 + $0x600] sm:$0xff]  ;;  %v278_v31 = vld [vmem:[#allocation3 + $0xa8] sm:$0xff] }
  0x66   :  { %643 = vmatpush.msra.mxu1 %v429_v44  ;;  %664 = vmatpush.msra.mxu2 %v459_v45  ;;  %v483_v3 = vld [vmem:[#allocation3 + $0x710] sm:$0xff]  ;;  %v417_v8 = vld [vmem:[#allocation3 + $0x500] sm:$0xff]  ;;  %v312_v32 = vld [vmem:[#allocation3 + $0x1b8] sm:$0xff] }
  0x67   :  { %683 = vmatpush.msra.mxu3 %v493_v46  ;;  %625 = vmatpush.msra.mxu0 %v393_v47  ;;  %v1256_v4 = vld.sshfl [vmem:[#allocation1] sm:$0xff pattern:$0x73625140]  ;;  %v1259_v5 = vld.sshfl [vmem:[#allocation1 + $0x18] sm:$0xff pattern:$0x73625140] }
  0x68   :  { %644 = vmatpush.msra.mxu1 %v427_v48  ;;  %665 = vmatpush.msra.mxu2 %v457_v49  ;;  %v481_v9 = vld [vmem:[#allocation3 + $0x700] sm:$0xff]  ;;  %v1268_v24 = vld.sshfl [vmem:[#allocation1 + $0x20] sm:$0xff pattern:$0x73625140]  ;;  %v342_v33 = vld [vmem:[#allocation3 + $0x2a8] sm:$0xff] }
  0x69   :  { %684 = vmatpush.msra.mxu3 %v491_v50  ;;  %626 = vmatpush.msra.mxu0 %v391_v51  ;;  %v1262_v10 = vld.sshfl [vmem:[#allocation1 + $0x8] sm:$0xff pattern:$0x73625140]  ;;  %v1266_v19 = vld.sshfl [vmem:[#allocation1 + $0x30] sm:$0xff pattern:$0x73625140] }
  0x6a   :  { %645 = vmatpush.msra.mxu1 %v425_v52  ;;  %666 = vmatpush.msra.mxu2 %v455_v53  ;;  %v1271_v25 = vld.sshfl [vmem:[#allocation1 + $0x38] sm:$0xff pattern:$0x73625140]  ;;  %v1274_v30 = vld.sshfl [vmem:[#allocation1 + $0x28] sm:$0xff pattern:$0x73625140] }
  0x6b   :  { %685 = vmatpush.msra.mxu3 %v489_v54  ;;  %627 = vmatpush.msra.mxu0 %v389_v55  ;;  %v376_v34 = vld [vmem:[#allocation3 + $0x3b8] sm:$0xff]  ;;  %v310_v36 = vld [vmem:[#allocation3 + $0x1a8] sm:$0xff] }
  0x6c   :  { %646 = vmatpush.msra.mxu1 %v423_v56  ;;  %667 = vmatpush.msra.mxu2 %v453_v57  ;;  %v276_v35 = vld [vmem:[#allocation3 + $0x98] sm:$0xff]  ;;  %v374_v38 = vld [vmem:[#allocation3 + $0x3a8] sm:$0xff] }
  0x6d   :  { %686 = vmatpush.msra.mxu3 %v487_v58  ;;  %628 = vmatpush.msra.mxu0 %v387_v59  ;;  %v340_v37 = vld [vmem:[#allocation3 + $0x298] sm:$0xff]  ;;  %v274_v39 = vld [vmem:[#allocation3 + $0x88] sm:$0xff] }
  0x6e   :  { %647 = vmatpush.msra.mxu1 %v421_v60  ;;  %668 = vmatpush.msra.mxu2 %v451_v61  ;;  %v308_v40 = vld [vmem:[#allocation3 + $0x198] sm:$0xff]  ;;  %v338_v41 = vld [vmem:[#allocation3 + $0x288] sm:$0xff] }
  0x6f   :  { %687 = vmatpush.msra.mxu3 %v485_v62  ;;  %590 = vmatmul.f32.vlgmr.msrb.gmra.mxu2 %v1254_v63  ;;  %v372_v42 = vld [vmem:[#allocation3 + $0x398] sm:$0xff]  ;;  %v306_v44 = vld [vmem:[#allocation3 + $0x188] sm:$0xff] }
  0x70   :  { %629 = vmatpush.msra.mxu0 %v385_v0  ;;  %648 = vmatpush.msra.mxu1 %v419_v1  ;;  %v272_v43 = vld [vmem:[#allocation3 + $0x78] sm:$0xff]  ;;  %v370_v46 = vld [vmem:[#allocation3 + $0x388] sm:$0xff] }
  0x71   :  { %669 = vmatpush.msra.mxu2 %v449_v2  ;;  %688 = vmatpush.msra.mxu3 %v483_v3  ;;  %v336_v45 = vld [vmem:[#allocation3 + $0x278] sm:$0xff]  ;;  %v270_v47 = vld [vmem:[#allocation3 + $0x68] sm:$0xff] }
  0x72   :  { %550 = vmatmul.f32.vlgmr.msrb.gmra.mxu0 %v1256_v4  ;;  %610 = vmatmul.f32.vlgmr.msrb.gmra.mxu3 %v1259_v5  ;;  %v304_v48 = vld [vmem:[#allocation3 + $0x178] sm:$0xff]  ;;  %v334_v49 = vld [vmem:[#allocation3 + $0x268] sm:$0xff] }
  0x73   :  { %694 = vmatpush.msrb.mxu0 %v288_v6  ;;  %734 = vmatpush.msrb.mxu2 %v352_v7  ;;  %v368_v50 = vld [vmem:[#allocation3 + $0x378] sm:$0xff]  ;;  %v302_v52 = vld [vmem:[#allocation3 + $0x168] sm:$0xff] }
  0x74   :  { %649 = vmatpush.msra.mxu1 %v417_v8  ;;  %689 = vmatpush.msra.mxu3 %v481_v9  ;;  %v268_v51 = vld [vmem:[#allocation3 + $0x58] sm:$0xff]  ;;  %v366_v54 = vld [vmem:[#allocation3 + $0x368] sm:$0xff] }
  0x75   :  { %570 = vmatmul.f32.vlgmr.msrb.gmra.mxu1 %v1262_v10  ;;  %695 = vmatpush.msrb.mxu0 %v286_v11  ;;  %v332_v53 = vld [vmem:[#allocation3 + $0x258] sm:$0xff]  ;;  %v266_v55 = vld [vmem:[#allocation3 + $0x48] sm:$0xff] }
  0x76   :  { %714 = vmatpush.msrb.mxu1 %v320_v12  ;;  %735 = vmatpush.msrb.mxu2 %v350_v13  ;;  %v300_v56 = vld [vmem:[#allocation3 + $0x158] sm:$0xff]  ;;  %v330_v57 = vld [vmem:[#allocation3 + $0x248] sm:$0xff] }
  0x77   :  { %754 = vmatpush.msrb.mxu3 %v384_v14  ;;  %696 = vmatpush.msrb.mxu0 %v284_v15  ;;  %v364_v58 = vld [vmem:[#allocation3 + $0x358] sm:$0xff]  ;;  %v298_v60 = vld [vmem:[#allocation3 + $0x148] sm:$0xff] }
  0x78   :  { %715 = vmatpush.msrb.mxu1 %v318_v16  ;;  %736 = vmatpush.msrb.mxu2 %v348_v17  ;;  %v264_v59 = vld [vmem:[#allocation3 + $0x38] sm:$0xff]  ;;  %v362_v62 = vld [vmem:[#allocation3 + $0x348] sm:$0xff] }
  0x79   :  { %755 = vmatpush.msrb.mxu3 %v382_v18  ;;  %670 = vmatmul.f32.vlgmr.msra.gmra.mxu2 %v1266_v19  ;;  %v328_v61 = vld [vmem:[#allocation3 + $0x238] sm:$0xff]  ;;  %v262_v0 = vld [vmem:[#allocation3 + $0x28] sm:$0xff] }
  0x7a   :  { %697 = vmatpush.msrb.mxu0 %v282_v20  ;;  %716 = vmatpush.msrb.mxu1 %v316_v21  ;;  %v296_v1 = vld [vmem:[#allocation3 + $0x138] sm:$0xff]  ;;  %v326_v2 = vld [vmem:[#allocation3 + $0x228] sm:$0xff] }
  0x7b   :  { %737 = vmatpush.msrb.mxu2 %v346_v22  ;;  %756 = vmatpush.msrb.mxu3 %v380_v23  ;;  %v360_v3 = vld [vmem:[#allocation3 + $0x338] sm:$0xff]  ;;  %v294_v7 = vld [vmem:[#allocation3 + $0x128] sm:$0xff] }
  0x7c   :  { %630 = vmatmul.f32.vlgmr.msra.gmra.mxu0 %v1268_v24  ;;  %690 = vmatmul.f32.vlgmr.msra.gmra.mxu3 %v1271_v25  ;;  %v260_v6 = vld [vmem:[#allocation3 + $0x18] sm:$0xff]  ;;  %v358_v9 = vld [vmem:[#allocation3 + $0x328] sm:$0xff] }
  0x7d   :  { %698 = vmatpush.msrb.mxu0 %v280_v26  ;;  %717 = vmatpush.msrb.mxu1 %v314_v27  ;;  %v324_v8 = vld [vmem:[#allocation3 + $0x218] sm:$0xff]  ;;  %v258_v11 = vld [vmem:[#allocation3 + $0x8] sm:$0xff] }
  0x7e   :  { %738 = vmatpush.msrb.mxu2 %v344_v28  ;;  %757 = vmatpush.msrb.mxu3 %v378_v29  ;;  %v292_v12 = vld [vmem:[#allocation3 + $0x118] sm:$0xff]  ;;  %v322_v13 = vld [vmem:[#allocation3 + $0x208] sm:$0xff] }
  0x7f   :  { %650 = vmatmul.f32.vlgmr.msra.gmra.mxu1 %v1274_v30  ;;  %699 = vmatpush.msrb.mxu0 %v278_v31  ;;  %v356_v14 = vld [vmem:[#allocation3 + $0x318] sm:$0xff]  ;;  %v290_v17 = vld [vmem:[#allocation3 + $0x108] sm:$0xff] }
  0x80   :  { %718 = vmatpush.msrb.mxu1 %v312_v32  ;;  %739 = vmatpush.msrb.mxu2 %v342_v33  ;;  %v416_v15 = vld [vmem:[#allocation3 + $0x4f8] sm:$0xff]  ;;  %v354_v18 = vld [vmem:[#allocation3 + $0x308] sm:$0xff] }
  0x81   :  { %758 = vmatpush.msrb.mxu3 %v376_v34  ;;  %700 = vmatpush.msrb.mxu0 %v276_v35  ;;  %v480_v16 = vld [vmem:[#allocation3 + $0x6f8] sm:$0xff]  ;;  %v414_v20 = vld [vmem:[#allocation3 + $0x4e8] sm:$0xff] }
  0x82   :  { %719 = vmatpush.msrb.mxu1 %v310_v36  ;;  %740 = vmatpush.msrb.mxu2 %v340_v37  ;;  %v448_v21 = vld [vmem:[#allocation3 + $0x5f8] sm:$0xff]  ;;  %v478_v22 = vld [vmem:[#allocation3 + $0x6e8] sm:$0xff] }
  0x83   :  { %759 = vmatpush.msrb.mxu3 %v374_v38  ;;  %701 = vmatpush.msrb.mxu0 %v274_v39  ;;  %v512_v23 = vld [vmem:[#allocation3 + $0x7f8] sm:$0xff]  ;;  %v446_v27 = vld [vmem:[#allocation3 + $0x5e8] sm:$0xff] }
  0x84   :  { %720 = vmatpush.msrb.mxu1 %v308_v40  ;;  %741 = vmatpush.msrb.mxu2 %v338_v41  ;;  %v412_v26 = vld [vmem:[#allocation3 + $0x4d8] sm:$0xff]  ;;  %v510_v29 = vld [vmem:[#allocation3 + $0x7e8] sm:$0xff] }
  0x85   :  { %760 = vmatpush.msrb.mxu3 %v372_v42  ;;  %702 = vmatpush.msrb.mxu0 %v272_v43  ;;  %v476_v28 = vld [vmem:[#allocation3 + $0x6d8] sm:$0xff]  ;;  %v410_v31 = vld [vmem:[#allocation3 + $0x4c8] sm:$0xff] }
  0x86   :  { %721 = vmatpush.msrb.mxu1 %v306_v44  ;;  %742 = vmatpush.msrb.mxu2 %v336_v45  ;;  %v444_v32 = vld [vmem:[#allocation3 + $0x5d8] sm:$0xff]  ;;  %v474_v33 = vld [vmem:[#allocation3 + $0x6c8] sm:$0xff] }
  0x87   :  { %761 = vmatpush.msrb.mxu3 %v370_v46  ;;  %703 = vmatpush.msrb.mxu0 %v270_v47  ;;  %v508_v34 = vld [vmem:[#allocation3 + $0x7d8] sm:$0xff]  ;;  %v442_v36 = vld [vmem:[#allocation3 + $0x5c8] sm:$0xff] }
  0x88   :  { %722 = vmatpush.msrb.mxu1 %v304_v48  ;;  %743 = vmatpush.msrb.mxu2 %v334_v49  ;;  %v408_v35 = vld [vmem:[#allocation3 + $0x4b8] sm:$0xff]  ;;  %v506_v38 = vld [vmem:[#allocation3 + $0x7c8] sm:$0xff] }
  0x89   :  { %762 = vmatpush.msrb.mxu3 %v368_v50  ;;  %704 = vmatpush.msrb.mxu0 %v268_v51  ;;  %v472_v37 = vld [vmem:[#allocation3 + $0x6b8] sm:$0xff]  ;;  %v406_v39 = vld [vmem:[#allocation3 + $0x4a8] sm:$0xff] }
  0x8a   :  { %723 = vmatpush.msrb.mxu1 %v302_v52  ;;  %744 = vmatpush.msrb.mxu2 %v332_v53  ;;  %v440_v40 = vld [vmem:[#allocation3 + $0x5b8] sm:$0xff]  ;;  %v470_v41 = vld [vmem:[#allocation3 + $0x6a8] sm:$0xff] }
  0x8b   :  { %763 = vmatpush.msrb.mxu3 %v366_v54  ;;  %705 = vmatpush.msrb.mxu0 %v266_v55  ;;  %v504_v42 = vld [vmem:[#allocation3 + $0x7b8] sm:$0xff]  ;;  %v438_v44 = vld [vmem:[#allocation3 + $0x5a8] sm:$0xff] }
  0x8c   :  { %724 = vmatpush.msrb.mxu1 %v300_v56  ;;  %745 = vmatpush.msrb.mxu2 %v330_v57  ;;  %v404_v43 = vld [vmem:[#allocation3 + $0x498] sm:$0xff]  ;;  %v502_v46 = vld [vmem:[#allocation3 + $0x7a8] sm:$0xff] }
  0x8d   :  { %764 = vmatpush.msrb.mxu3 %v364_v58  ;;  %706 = vmatpush.msrb.mxu0 %v264_v59  ;;  %v468_v45 = vld [vmem:[#allocation3 + $0x698] sm:$0xff]  ;;  %v402_v47 = vld [vmem:[#allocation3 + $0x488] sm:$0xff] }
  0x8e   :  { %725 = vmatpush.msrb.mxu1 %v298_v60  ;;  %746 = vmatpush.msrb.mxu2 %v328_v61  ;;  %v436_v48 = vld [vmem:[#allocation3 + $0x598] sm:$0xff]  ;;  %v466_v49 = vld [vmem:[#allocation3 + $0x688] sm:$0xff] }
  0x8f   :  { %765 = vmatpush.msrb.mxu3 %v362_v62  ;;  %707 = vmatpush.msrb.mxu0 %v262_v0  ;;  %v500_v50 = vld [vmem:[#allocation3 + $0x798] sm:$0xff]  ;;  %v434_v52 = vld [vmem:[#allocation3 + $0x588] sm:$0xff] }
  0x90   :  { %726 = vmatpush.msrb.mxu1 %v296_v1  ;;  %747 = vmatpush.msrb.mxu2 %v326_v2  ;;  %v400_v51 = vld [vmem:[#allocation3 + $0x478] sm:$0xff]  ;;  %v498_v54 = vld [vmem:[#allocation3 + $0x788] sm:$0xff] }
  0x91   :  { %766 = vmatpush.msrb.mxu3 %v360_v3  ;;  %708 = vmatpush.msrb.mxu0 %v260_v6  ;;  %v464_v53 = vld [vmem:[#allocation3 + $0x678] sm:$0xff]  ;;  %v398_v55 = vld [vmem:[#allocation3 + $0x468] sm:$0xff] }
  0x92   :  { %727 = vmatpush.msrb.mxu1 %v294_v7  ;;  %748 = vmatpush.msrb.mxu2 %v324_v8  ;;  %v432_v56 = vld [vmem:[#allocation3 + $0x578] sm:$0xff]  ;;  %v462_v57 = vld [vmem:[#allocation3 + $0x668] sm:$0xff] }
  0x93   :  { %767 = vmatpush.msrb.mxu3 %v358_v9  ;;  %709 = vmatpush.msrb.mxu0 %v258_v11  ;;  %v496_v58 = vld [vmem:[#allocation3 + $0x778] sm:$0xff]  ;;  %v430_v60 = vld [vmem:[#allocation3 + $0x568] sm:$0xff] }
  0x94   :  { %728 = vmatpush.msrb.mxu1 %v292_v12  ;;  %749 = vmatpush.msrb.mxu2 %v322_v13  ;;  %v396_v59 = vld [vmem:[#allocation3 + $0x458] sm:$0xff]  ;;  %v494_v62 = vld [vmem:[#allocation3 + $0x768] sm:$0xff] }
  0x95   :  { %768 = vmatpush.msrb.mxu3 %v356_v14  ;;  %774 = vmatpush.msra.mxu0 %v416_v15  ;;  %v460_v61 = vld [vmem:[#allocation3 + $0x658] sm:$0xff]  ;;  %v394_v0 = vld [vmem:[#allocation3 + $0x448] sm:$0xff] }
  0x96   :  { %814 = vmatpush.msra.mxu2 %v480_v16  ;;  %729 = vmatpush.msrb.mxu1 %v290_v17  ;;  %v428_v1 = vld [vmem:[#allocation3 + $0x558] sm:$0xff]  ;;  %v458_v2 = vld [vmem:[#allocation3 + $0x648] sm:$0xff] }
  0x97   :  { %769 = vmatpush.msrb.mxu3 %v354_v18  ;;  %775 = vmatpush.msra.mxu0 %v414_v20  ;;  %v492_v3 = vld [vmem:[#allocation3 + $0x758] sm:$0xff]  ;;  %v426_v7 = vld [vmem:[#allocation3 + $0x548] sm:$0xff] }
  0x98   :  { %794 = vmatpush.msra.mxu1 %v448_v21  ;;  %815 = vmatpush.msra.mxu2 %v478_v22  ;;  %v392_v6 = vld [vmem:[#allocation3 + $0x438] sm:$0xff]  ;;  %v490_v9 = vld [vmem:[#allocation3 + $0x748] sm:$0xff]  ;;  %v155_v22 = vld [vmem:[%s1379_s4] sm:$0x3] }
  0x99   :  { %834 = vmatpush.msra.mxu3 %v512_v23  ;;  %776 = vmatpush.msra.mxu0 %v412_v26  ;;  %v456_v8 = vld [vmem:[#allocation3 + $0x638] sm:$0xff]  ;;  %v390_v11 = vld [vmem:[#allocation3 + $0x428] sm:$0xff]  ;;  %v158_v23 = vperm.slane %v155_v22, 1  ;;  %v157_v26 = vperm.slane %v155_v22, 0 }
  0x9a   :  { %795 = vmatpush.msra.mxu1 %v446_v27  ;;  %816 = vmatpush.msra.mxu2 %v476_v28  ;;  %v424_v12 = vld [vmem:[#allocation3 + $0x538] sm:$0xff]  ;;  %v454_v13 = vld [vmem:[#allocation3 + $0x628] sm:$0xff] }
  0x9b   :  { %835 = vmatpush.msra.mxu3 %v510_v29  ;;  %777 = vmatpush.msra.mxu0 %v410_v31  ;;  %v488_v14 = vld [vmem:[#allocation3 + $0x738] sm:$0xff]  ;;  %v422_v15 = vld [vmem:[#allocation3 + $0x528] sm:$0xff] }
  0x9c   :  { %796 = vmatpush.msra.mxu1 %v444_v32  ;;  %817 = vmatpush.msra.mxu2 %v474_v33  ;;  %v452_v16 = vld [vmem:[#allocation3 + $0x618] sm:$0xff]  ;;  %v486_v17 = vld [vmem:[#allocation3 + $0x728] sm:$0xff] }
  0x9d   :  { %836 = vmatpush.msra.mxu3 %v508_v34  ;;  %778 = vmatpush.msra.mxu0 %v408_v35  ;;  %v450_v18 = vld [vmem:[#allocation3 + $0x608] sm:$0xff]  ;;  %v484_v20 = vld [vmem:[#allocation3 + $0x718] sm:$0xff] }
  0x9e   :  { %797 = vmatpush.msra.mxu1 %v442_v36  ;;  %818 = vmatpush.msra.mxu2 %v472_v37  ;;  %v418_v21 = vld [vmem:[#allocation3 + $0x508] sm:$0xff]  ;;  %v898_v35 = vld [vmem:[#allocation8 + $0xf8] sm:$0xff]  ;;  %v881_v36 = vld [vmem:[#allocation8 + $0x70] sm:$0xff] }
  0x9f   :  { %837 = vmatpush.msra.mxu3 %v506_v38  ;;  %779 = vmatpush.msra.mxu0 %v406_v39  ;;  %v897_v37 = vld [vmem:[#allocation8 + $0xf0] sm:$0xff]  ;;  %v880_v39 = vld [vmem:[#allocation8 + $0x68] sm:$0xff] }
  0xa0   :  { %798 = vmatpush.msra.mxu1 %v440_v40  ;;  %819 = vmatpush.msra.mxu2 %v470_v41  ;;  %v896_v40 = vld [vmem:[#allocation8 + $0xe8] sm:$0xff] }
  0xa1   :  { %838 = vmatpush.msra.mxu3 %v504_v42  ;;  %780 = vmatpush.msra.mxu0 %v404_v43  ;;  %v879_v43 = vld [vmem:[#allocation8 + $0x60] sm:$0xff] }
  0xa2   :  { %799 = vmatpush.msra.mxu1 %v438_v44  ;;  %820 = vmatpush.msra.mxu2 %v468_v45  ;;  %v895_v44 = vld [vmem:[#allocation8 + $0xe0] sm:$0xff]  ;;  %v878_v45 = vld [vmem:[#allocation8 + $0x58] sm:$0xff] }
  0xa3   :  { %839 = vmatpush.msra.mxu3 %v502_v46  ;;  %781 = vmatpush.msra.mxu0 %v402_v47  ;;  %v894_v46 = vld [vmem:[#allocation8 + $0xd8] sm:$0xff] }
  0xa4   :  { %800 = vmatpush.msra.mxu1 %v436_v48  ;;  %821 = vmatpush.msra.mxu2 %v466_v49  ;;  %v877_v48 = vld [vmem:[#allocation8 + $0x50] sm:$0xff] }
  0xa5   :  { %840 = vmatpush.msra.mxu3 %v500_v50  ;;  %782 = vmatpush.msra.mxu0 %v400_v51  ;;  %v893_v49 = vld [vmem:[#allocation8 + $0xd0] sm:$0xff]  ;;  %v876_v51 = vld [vmem:[#allocation8 + $0x48] sm:$0xff] }
  0xa6   :  { %801 = vmatpush.msra.mxu1 %v434_v52  ;;  %822 = vmatpush.msra.mxu2 %v464_v53  ;;  %v892_v52 = vld [vmem:[#allocation8 + $0xc8] sm:$0xff]  ;;  %v875_v53 = vld [vmem:[#allocation8 + $0x40] sm:$0xff] }
  0xa7   :  { %841 = vmatpush.msra.mxu3 %v498_v54  ;;  %783 = vmatpush.msra.mxu0 %v398_v55  ;;  %v891_v54 = vld [vmem:[#allocation8 + $0xc0] sm:$0xff] }
  0xa8   :  { %802 = vmatpush.msra.mxu1 %v432_v56  ;;  %823 = vmatpush.msra.mxu2 %v462_v57  ;;  %v874_v57 = vld [vmem:[#allocation8 + $0x38] sm:$0xff] }
  0xa9   :  { %842 = vmatpush.msra.mxu3 %v496_v58  ;;  %784 = vmatpush.msra.mxu0 %v396_v59  ;;  %v890_v58 = vld [vmem:[#allocation8 + $0xb8] sm:$0xff] }
  0xaa   :  { %803 = vmatpush.msra.mxu1 %v430_v60  ;;  %824 = vmatpush.msra.mxu2 %v460_v61  ;;  %v873_v60 = vld [vmem:[#allocation8 + $0x30] sm:$0xff] }
  0xab   :  { %843 = vmatpush.msra.mxu3 %v494_v62  ;;  %750 = vmatmul.f32.vlgmr.msrb.gmra.mxu2 %v1254_v63  ;;  %v388_v63 = vld [vmem:[#allocation3 + $0x418] sm:$0xff]  ;;  %v889_v61 = vld [vmem:[#allocation8 + $0xb0] sm:$0xff] }
  0xac   :  { %785 = vmatpush.msra.mxu0 %v394_v0  ;;  %804 = vmatpush.msra.mxu1 %v428_v1  ;;  %v872_v1 = vld [vmem:[#allocation8 + $0x28] sm:$0xff] }
  0xad   :  { %825 = vmatpush.msra.mxu2 %v458_v2  ;;  %844 = vmatpush.msra.mxu3 %v492_v3  ;;  %v888_v2 = vld [vmem:[#allocation8 + $0xa8] sm:$0xff] }
  0xae   :  { %710 = vmatmul.f32.vlgmr.msrb.gmra.mxu0 %v1256_v4  ;;  %770 = vmatmul.f32.vlgmr.msrb.gmra.mxu3 %v1259_v5  ;;  %v386_v4 = vld [vmem:[#allocation3 + $0x408] sm:$0xff]  ;;  %v420_v5 = vld [vmem:[#allocation3 + $0x518] sm:$0xff] }
  0xaf   :  { %786 = vmatpush.msra.mxu0 %v392_v6  ;;  %805 = vmatpush.msra.mxu1 %v426_v7  ;;  %v871_v6 = vld [vmem:[#allocation8 + $0x20] sm:$0xff] }
  0xb0   :  { %826 = vmatpush.msra.mxu2 %v456_v8  ;;  %845 = vmatpush.msra.mxu3 %v490_v9  ;;  %v887_v7 = vld [vmem:[#allocation8 + $0xa0] sm:$0xff] }
  0xb1   :  { %730 = vmatmul.f32.vlgmr.msrb.gmra.mxu1 %v1262_v10  ;;  %787 = vmatpush.msra.mxu0 %v390_v11  ;;  %v482_v10 = vld [vmem:[#allocation3 + $0x708] sm:$0xff] }
  0xb2   :  { %806 = vmatpush.msra.mxu1 %v424_v12  ;;  %827 = vmatpush.msra.mxu2 %v454_v13  ;;  %v870_v12 = vld [vmem:[#allocation8 + $0x18] sm:$0xff] }
  0xb3   :  { %846 = vmatpush.msra.mxu3 %v488_v14  ;;  %788 = vmatpush.msra.mxu0 %v388_v63  ;;  %v886_v13 = vld [vmem:[#allocation8 + $0x98] sm:$0xff]  ;;  %v869_v14 = vld [vmem:[#allocation8 + $0x10] sm:$0xff] }
  0xb4   :  { %807 = vmatpush.msra.mxu1 %v422_v15  ;;  %828 = vmatpush.msra.mxu2 %v452_v16  ;;  %v885_v15 = vld [vmem:[#allocation8 + $0x90] sm:$0xff] }
  0xb5   :  { %847 = vmatpush.msra.mxu3 %v486_v17  ;;  %789 = vmatpush.msra.mxu0 %v386_v4  ;;  %v868_v17 = vld [vmem:[#allocation8 + $0x8] sm:$0xff] }
  0xb6   :  { %808 = vmatpush.msra.mxu1 %v420_v5  ;;  %829 = vmatpush.msra.mxu2 %v450_v18  ;;  %v884_v4 = vld [vmem:[#allocation8 + $0x88] sm:$0xff] }
  0xb7   :  { %848 = vmatpush.msra.mxu3 %v484_v20  ;;  %790 = vmatmul.f32.vlgmr.msra.gmra.mxu0 %v1268_v24  ;;  %v867_v20 = vld [vmem:[#allocation8] sm:$0xff] }
  0xb8   :  { %830 = vmatmul.f32.vlgmr.msra.gmra.mxu2 %v1266_v19  ;;  %809 = vmatpush.msra.mxu1 %v418_v21  ;;  %v883_v21 = vld [vmem:[#allocation8 + $0x80] sm:$0xff] }
  0xb9   :  { %849 = vmatpush.msra.mxu3 %v482_v10  ;;  %810 = vmatmul.f32.vlgmr.msra.gmra.mxu1 %v1274_v30 }
  0xba   :  { %850 = vmatmul.f32.vlgmr.msra.gmra.mxu3 %v1271_v25  ;;  %v882_v25 = vld [vmem:[#allocation8 + $0x78] sm:$0xff]  ;;  %929 = vmatpush.msrb.mxu1 %v898_v35 }
  0xbb   :  { %909 = vmatpush.msrb.mxu0 %v882_v25  ;;  %v961_v25 = vld [vmem:[%s1382_s7 + $0x58] sm:$0xff] }
  0xbc   :  { %930 = vmatpush.msrb.mxu1 %v897_v37 }
  0xbd   :  { %910 = vmatpush.msrb.mxu0 %v881_v36  ;;  %v960_v36 = vld [vmem:[%s1382_s7 + $0x50] sm:$0xff] }
  0xbe   :  { %931 = vmatpush.msrb.mxu1 %v896_v40 }
  0xbf   :  { %911 = vmatpush.msrb.mxu0 %v880_v39  ;;  %v959_v39 = vld [vmem:[%s1382_s7 + $0x48] sm:$0xff] }
  0xc0   :  { %932 = vmatpush.msrb.mxu1 %v895_v44  ;;  %v957_v44 = vld [vmem:[%s1382_s7 + $0x38] sm:$0xff] }
  0xc1   :  { %912 = vmatpush.msrb.mxu0 %v879_v43  ;;  %v958_v43 = vld [vmem:[%s1382_s7 + $0x40] sm:$0xff] }
  0xc2   :  { %933 = vmatpush.msrb.mxu1 %v894_v46  ;;  %v955_v46 = vld [vmem:[%s1382_s7 + $0x28] sm:$0xff] }
  0xc3   :  { %913 = vmatpush.msrb.mxu0 %v878_v45  ;;  %v956_v45 = vld [vmem:[%s1382_s7 + $0x30] sm:$0xff] }
  0xc4   :  { %934 = vmatpush.msrb.mxu1 %v893_v49 }
  0xc5   :  { %914 = vmatpush.msrb.mxu0 %v877_v48 }
  0xc6   :  { %935 = vmatpush.msrb.mxu1 %v892_v52  ;;  %v953_v52 = vld [vmem:[%s1382_s7 + $0x18] sm:$0xff] }
  0xc7   :  { %915 = vmatpush.msrb.mxu0 %v876_v51 }
  0xc8   :  { %936 = vmatpush.msrb.mxu1 %v891_v54  ;;  %v951_v54 = vld [vmem:[%s1382_s7 + $0x8] sm:$0xff] }
  0xc9   :  { %916 = vmatpush.msrb.mxu0 %v875_v53  ;;  %v952_v53 = vld [vmem:[%s1382_s7 + $0x10] sm:$0xff] }
  0xca   :  { %937 = vmatpush.msrb.mxu1 %v890_v58  ;;  %v996_v58 = vld [vmem:[%s1384_s9 + $0x28] sm:$0xff] }
  0xcb   :  { %917 = vmatpush.msrb.mxu0 %v874_v57  ;;  %v997_v57 = vld [vmem:[%s1384_s9 + $0x30] sm:$0xff] }
  0xcc   :  { %938 = vmatpush.msrb.mxu1 %v889_v61  ;;  %v1055_v61 = vld [vmem:[%s1381_s6] ss:$0 sm:$0xff] }
  0xcd   :  { %v224_v27 = vpop.f32.mrf.mxu2  ;;  %v184_v29 = vpop.f32.mrf.mxu0  ;;  %918 = vmatpush.msrb.mxu0 %v873_v60  ;;  %v994_v60 = vld [vmem:[%s1384_s9 + $0x18] sm:$0xff] }
  0xce   :  { %v225_v28 = vadd.f32 %v224_v27, %v158_v23  ;;  %v185_v31 = vadd.f32 %v184_v29, %v157_v26  ;;  %939 = vmatpush.msrb.mxu1 %v888_v2  ;;  %v965_v27 = vld [vmem:[%s1382_s7 + $0x78] sm:$0xff] }
  0xcf   :  { %v244_v32 = vpop.f32.mrf.mxu3  ;;  %919 = vmatpush.msrb.mxu0 %v872_v1  ;;  %970 = vmatpush.msrb.mxu2 %v965_v27 }
  0xd0   :  { %v204_v24 = vpop.f32.mrf.mxu1  ;;  %v245_v33 = vadd.f32 %v244_v32, %v225_v28  ;;  %940 = vmatpush.msrb.mxu1 %v887_v7  ;;  %v964_v28 = vld [vmem:[%s1382_s7 + $0x70] sm:$0xff]  ;;  %v992_v7 = vld [vmem:[%s1384_s9 + $0x8] sm:$0xff] }
  0xd1   :  { %v205_v19 = vadd.f32 %v204_v24, %v185_v31  ;;  %920 = vmatpush.msrb.mxu0 %v871_v6  ;;  %v963_v31 = vld [vmem:[%s1382_s7 + $0x68] sm:$0xff]  ;;  %971 = vmatpush.msrb.mxu2 %v964_v28  ;;  %v993_v6 = vld [vmem:[%s1384_s9 + $0x10] sm:$0xff] }
  0xd2   :  { %v249_v34 = vrot.slane %v245_v33, 6  ;;  %941 = vmatpush.msrb.mxu1 %v886_v13  ;;  %v962_v33 = vld [vmem:[%s1382_s7 + $0x60] sm:$0xff] }
  0xd3   :  { %921 = vmatpush.msrb.mxu0 %v870_v12  ;;  %972 = vmatpush.msrb.mxu2 %v963_v31 }
  0xd4   :  { %v251_v30 = vsel %vm250_vm0, %v205_v19, %v249_v34  ;;  %942 = vmatpush.msrb.mxu1 %v885_v15 }
  0xd5   :  { %253 = vst [vmem:[#allocation2] sm:$0xf] %v251_v30  ;;  %922 = vmatpush.msrb.mxu0 %v869_v14  ;;  %973 = vmatpush.msrb.mxu2 %v962_v33  ;;  %v1057_v14 = vld [vmem:[%s1385_s10] ss:$0 sm:$0xff] }
  0xd6   :  { %943 = vmatpush.msrb.mxu1 %v884_v4 }
  0xd7   :  { %923 = vmatpush.msrb.mxu0 %v868_v17  ;;  %974 = vmatpush.msrb.mxu2 %v961_v25 }
  0xd8   :  { %944 = vmatpush.msrb.mxu1 %v883_v21 }
  0xd9   :  { %924 = vmatpush.msrb.mxu0 %v867_v20  ;;  %975 = vmatpush.msrb.mxu2 %v960_v36 }
  0xdb   :  { %976 = vmatpush.msrb.mxu2 %v959_v39 }
  0xdc   :  { %v254_v40 = vld [vmem:[#allocation2] sm:$0xf] }
  0xdd   :  { %977 = vmatpush.msrb.mxu2 %v958_v43 }
  0xdf   :  { %978 = vmatpush.msrb.mxu2 %v957_v44 }
  0xe1   :  { %979 = vmatpush.msrb.mxu2 %v956_v45 }
  0xe3   :  { %980 = vmatpush.msrb.mxu2 %v955_v46 }
  0xef   :  { %v551_v38 = vpop.f32.mrf.mxu0 }
  0xf2   :  { %v571_v41 = vpop.f32.mrf.mxu1  ;;  %v591_v42 = vpop.f32.mrf.mxu2 }
  0xf3   :  { %v572_v59 = vadd.f32 %v571_v41, %v551_v38 }
  0xf5   :  { %v611_v47 = vpop.f32.mrf.mxu3  ;;  %v592_v3 = vadd.f32 %v591_v42, %v572_v59  ;;  %v995_v59 = vld [vmem:[%s1384_s9 + $0x20] sm:$0xff] }
  0xf7   :  { %v612_v63 = vadd.f32 %v611_v47, %v592_v3  ;;  %v954_v47 = vld [vmem:[%s1382_s7 + $0x20] sm:$0xff] }
  0xf8   :  { %981 = vmatpush.msrb.mxu2 %v954_v47 }
  0xf9   :  { %v631_v50 = vpop.f32.mrf.mxu0 }
  0xfa   :  { %v632_v10 = vadd.f32 %v631_v50, %v612_v63  ;;  %982 = vmatpush.msrb.mxu2 %v953_v52 }
  0xfc   :  { %v651_v55 = vpop.f32.mrf.mxu1  ;;  %v671_v56 = vpop.f32.mrf.mxu2  ;;  %983 = vmatpush.msrb.mxu2 %v952_v53 }
  0xfd   :  { %v652_v29 = vadd.f32 %v651_v55, %v632_v10  ;;  %v950_v55 = vld [vmem:[%s1382_s7] sm:$0xff] }
  0xfe   :  { %984 = vmatpush.msrb.mxu2 %v951_v54 }
  0xff   :  { %v691_v62 = vpop.f32.mrf.mxu3  ;;  %v672_v19 = vadd.f32 %v671_v56, %v652_v29  ;;  %v998_v56 = vld [vmem:[%s1384_s9 + $0x38] sm:$0xff] }
 0x100   :  { %985 = vmatpush.msrb.mxu2 %v950_v55  ;;  %1015 = vmatpush.msrb.mxu3 %v998_v56 }
 0x101   :  { %v692_v37 = vadd.f32 %v691_v62, %v672_v19 }
 0x102   :  { %1016 = vmatpush.msrb.mxu3 %v997_v57 }
 0x104   :  { %1017 = vmatpush.msrb.mxu3 %v996_v58 }
 0x106   :  { %1018 = vmatpush.msrb.mxu3 %v995_v59 }
 0x108   :  { %1019 = vmatpush.msrb.mxu3 %v994_v60 }
 0x10a   :  { %1020 = vmatpush.msrb.mxu3 %v993_v6 }
 0x10c   :  { %1021 = vmatpush.msrb.mxu3 %v992_v7 }
 0x12b   :  { %v711_v0 = vpop.f32.mrf.mxu0 }
 0x12e   :  { %v731_v8 = vpop.f32.mrf.mxu1  ;;  %v751_v11 = vpop.f32.mrf.mxu2 }
 0x12f   :  { %v732_v9 = vadd.f32 %v731_v8, %v711_v0  ;;  %v991_v8 = vld [vmem:[%s1384_s9] sm:$0xff]  ;;  %s1035_s9 = sshll.u32 %s1386_s11, 4  ;;  %s1036_s9 = int_to_ptr.hbm [resolvable:$true] %s1035_s9 }
 0x130   :  { %1022 = vmatpush.msrb.mxu3 %v991_v8 }
 0x131   :  { %v752_v16 = vadd.f32 %v751_v11, %v732_v9  ;;  %v771_v5 = vpop.f32.mrf.mxu3  ;;  %v1056_v9 = vld [vmem:[%s1383_s8] ss:$0 sm:$0xff] }
 0x133   :  { %v772_v18 = vadd.f32 %v771_v5, %v752_v16 }
 0x134   :  { %v791_v22 = vpop.f32.mrf.mxu0 }
 0x135   :  { %v792_v23 = vadd.f32 %v791_v22, %v772_v18 }
 0x136   :  { %v811_v26 = vpop.f32.mrf.mxu1 }
 0x137   :  { %v812_v32 = vadd.f32 %v811_v26, %v792_v23 }
 0x13b   :  { %v831_v24 = vpop.f32.mrf.mxu2 }
 0x13c   :  { %v832_v34 = vadd.f32 %v831_v24, %v812_v32 }
 0x13d   :  { %v851_v30 = vpop.f32.mrf.mxu3 }
 0x13e   :  { %v852_v35 = vadd.f32 %v851_v30, %v832_v34 }
 0x140   :  { %v856_v38 = vrot.slane %v852_v35, 6 }
 0x142   :  { %v858_v41 = vsel %vm250_vm0, %v692_v37, %v856_v38 }
 0x143   :  { %v860_v42 = vadd.f32 %v858_v41, %v254_v40 }
 0x145   :  { %861 = vst [vmem:[#allocation2] sm:$0xf] %v860_v42 }
 0x14c   :  { %v865_v48 = vld [vmem:[#allocation2] sm:$0xf] }
 0x14d   :  { %v866_v49 = vmax.f32 %v865_v48, 0.0 }
 0x14f   :  { %904 = vst [vmem:[#allocation1] ss:$4 sm:$0xff] %v866_v49 }
 0x156   :  { %v905_v50 = vld.sshfl [vmem:[#allocation1] sm:$0xff pattern:$0x73625140]  ;;  %v906_v51 = vld.sshfl [vmem:[#allocation1 + $0x8] sm:$0xff pattern:$0x73625140] }
 0x157   :  { %925 = vmatmul.f32.vlgmr.msrb.gmra.mxu0 %v905_v50  ;;  %945 = vmatmul.f32.vlgmr.msrb.gmra.mxu1 %v906_v51 }
 0x1d4   :  { %v926_v62 = vpop.f32.mrf.mxu0  ;;  %v946_v1 = vpop.f32.mrf.mxu1 }
 0x1d5   :  { %v927_v0 = vadd.f32 %v1055_v61, %v926_v62 }
 0x1d7   :  { %v947_v2 = vadd.f32 %v946_v1, %v927_v0 }
 0x1d9   :  { %v949_v3 = vmax.f32 %v947_v2, 0.0 }
 0x1db   :  { %986 = vmatmul.f32.vlgmr.msrb.gmra.mxu2 %v949_v3 }
 0x25e   :  { %v987_v11 = vpop.f32.mrf.mxu2 }
 0x25f   :  { %v988_v12 = vadd.f32 %v1056_v9, %v987_v11 }
 0x261   :  { %v990_v13 = vmax.f32 %v988_v12, 0.0 }
 0x263   :  { %1046 = vmatmul.msk.f32.vlgmr.msrb.gmra.mxu3 %vm1003_vm1, %v990_v13 }
 0x2e6   :  { %v1024_v63 = vpop.f32.mrf.mxu3 }
 0x2e7   :  { %v1025_v15 = vadd.f32 %v1057_v14, %v1024_v63 }
 0x2e9   :  { %1027 = vst [vmem:[#allocation9] sm:$0x3] %v1025_v15 }
 0x2ea   :  { %1038 = dma.vmem_to_hbm [thread:$0]  %s1034_s22, 32, %s1036_s9, [#allocation5]  }
 0x2eb   :  { %1158 = dma.done.wait [#allocation5], 32  }
 0x2ec   :  { %1159 = vsyncadd [#allocation5], 4294967264 }
 0x2ed   :  { %1043 = vsyncpa [#allocation4], 1 }
 0x2ee   :  { %1044 = vsyncpa [#allocation7], 1 }
 0x2ef   :  { %1045 = vsyncpa [#allocation5], 1 }

</bundles_post_ra>
